<compile_context>
chip_gen: v6e
topology: v6e:2x2x1
jax: 0.10.0
libtpu: 0.0.40
codegen_flags: <defaults>
</compile_context>

<pallas_src>
import functools

import jax
import jax.numpy as jnp
from jax.experimental import pallas as pl
from jax.experimental.pallas import tpu as pltpu

GROUPS = 4     # cardinality of the grouped 3x3 conv (scaled-down analogue of 32/64)
CPAD = 128     # internal lane-dense channel padding
FEAT_C = 64    # real output channel count of this scaled-down feature extractor


# ---------------------------------------------------------------------------
# Pallas kernels
# ---------------------------------------------------------------------------

def _matmul_bn_act_kernel(a_ref, w_ref, s_ref, b_ref, o_ref, *, relu):
    # a: (bm, K) bf16, w: (K, C) bf16  -> MXU matmul, f32 accumulate.
    y = jnp.dot(a_ref[...], w_ref[...], preferred_element_type=jnp.float32)
    y = y * s_ref[...] + b_ref[...]          # folded eval-mode BN (f32 epilogue)
    if relu:
        y = jnp.maximum(y, 0.0)
    o_ref[...] = y.astype(o_ref.dtype)


def _bottleneck_tail_kernel(a_ref, w2_ref, s2_ref, b2_ref,
                            w3_ref, s3_ref, b3_ref, xin_ref, *rest, has_down):
    """Fused bottleneck tail: 3x3 conv + BN + ReLU -> 1x1 expand + BN ->
    shortcut (identity or 1x1 conv + BN) -> residual add -> ReLU.
    Intermediates never leave VMEM."""
    if has_down:
        wd_ref, sd_ref, bd_ref, o_ref = rest
    else:
        (o_ref,) = rest

    # 3x3 (de-grouped, block-diagonal dense) conv via im2col matmul.
    y = jnp.dot(a_ref[...], w2_ref[...], preferred_element_type=jnp.float32)
    y = jnp.maximum(y * s2_ref[...] + b2_ref[...], 0.0)

    # 1x1 expand conv + BN.
    z = jnp.dot(y.astype(jnp.bfloat16), w3_ref[...],
                preferred_element_type=jnp.float32)
    z = z * s3_ref[...] + b3_ref[...]

    # Shortcut path.
    if has_down:
        sc = jnp.dot(xin_ref[...], wd_ref[...],
                     preferred_element_type=jnp.float32)
        sc = sc * sd_ref[...] + bd_ref[...]
    else:
        sc = xin_ref[...].astype(jnp.float32)

    o_ref[...] = jnp.maximum(z + sc, 0.0).astype(o_ref.dtype)


def _maxpool_kernel(p_ref, o_ref, *, kk):
    # p: (kk, M, C), window axis leading (so the sublane dim is M, not kk).
    acc = p_ref[0, :, :].astype(jnp.float32)
    for t in range(1, kk):
        acc = jnp.maximum(acc, p_ref[t, :, :].astype(jnp.float32))
    o_ref[...] = acc.astype(o_ref.dtype)


# ---------------------------------------------------------------------------
# Pallas wrappers
# ---------------------------------------------------------------------------

def _block_m(M):
    # Single block at these tiny shapes; tiles kick in at real ResNeXt widths
    # (M = N*56*56, ...).  v7x note: tiles already re-budgeted for 64 MiB VMEM.
    for bm in (1024, 512, 256):
        if M % bm == 0:
            return bm
    return M


def _vec(v, c):
    return v.astype(jnp.float32).reshape(1, c)


def matmul_bn_act(a, w, scale, bias, *, relu, out_dtype=jnp.bfloat16):
    """Fused (a @ w) * scale + bias [+ ReLU].

    a: [M, K], w: [K, C], scale/bias: [C].
    Matmul inputs are bf16 (MXU), accumulation and epilogue are f32.
    """
    M, K = a.shape
    _, C = w.shape

    a16 = a.astype(jnp.bfloat16)
    w16 = w.astype(jnp.bfloat16)
    # Pad the contraction dim to a lane multiple (zero rows/cols: result unchanged).
    Kp = ((K + 127) // 128) * 128
    if Kp != K:
        a16 = jnp.pad(a16, ((0, 0), (0, Kp - K)))
        w16 = jnp.pad(w16, ((0, Kp - K), (0, 0)))

    bm = _block_m(M)
    grid = (M // bm,)

    return pl.pallas_call(
        functools.partial(_matmul_bn_act_kernel, relu=relu),
        out_shape=jax.ShapeDtypeStruct((M, C), out_dtype),
        grid=grid,
        in_specs=[
            pl.BlockSpec((bm, Kp), lambda i: (i, 0)),
            pl.BlockSpec((Kp, C), lambda i: (0, 0)),
            pl.BlockSpec((1, C), lambda i: (0, 0)),
            pl.BlockSpec((1, C), lambda i: (0, 0)),
        ],
        out_specs=pl.BlockSpec((bm, C), lambda i: (i, 0)),
        compiler_params=pltpu.CompilerParams(dimension_semantics=("parallel",)),
    )(a16, w16, _vec(scale, C), _vec(bias, C))


def bottleneck_tail(a, w2, s2, b2, w3, s3, b3, xin,
                    wd=None, sd=None, bd=None, out_dtype=jnp.bfloat16):
    """One fused Pallas call for the tail of a bottleneck block.

    a:   [M, 9*C]   im2col of the (already BN+ReLU'd) 1x1-reduce output
    w2:  [9*C, C]   de-grouped 3x3 weight (block-diagonal dense)
    w3:  [C, C]     1x1 expand weight
    xin: [M, C]     block input (identity shortcut, or downsample-conv input)
    wd/sd/bd:       optional 1x1 downsample conv weight + folded BN
    """
    M, K = a.shape
    C = w3.shape[-1]

    a16 = a.astype(jnp.bfloat16)
    w2m = w2.astype(jnp.bfloat16)
    w3m = w3.astype(jnp.bfloat16)
    xin16 = xin.astype(jnp.bfloat16)

    bm = _block_m(M)
    grid = (M // bm,)

    in_specs = [
        pl.BlockSpec((bm, K), lambda i: (i, 0)),
        pl.BlockSpec((K, C), lambda i: (0, 0)),
        pl.BlockSpec((1, C), lambda i: (0, 0)),
        pl.BlockSpec((1, C), lambda i: (0, 0)),
        pl.BlockSpec((C, C), lambda i: (0, 0)),
        pl.BlockSpec((1, C), lambda i: (0, 0)),
        pl.BlockSpec((1, C), lambda i: (0, 0)),
        pl.BlockSpec((bm, C), lambda i: (i, 0)),
    ]
    args = [a16, w2m, _vec(s2, C), _vec(b2, C), w3m, _vec(s3, C), _vec(b3, C),
            xin16]
    has_down = wd is not None
    if has_down:
        in_specs += [
            pl.BlockSpec((C, C), lambda i: (0, 0)),
            pl.BlockSpec((1, C), lambda i: (0, 0)),
            pl.BlockSpec((1, C), lambda i: (0, 0)),
        ]
        args += [wd.astype(jnp.bfloat16), _vec(sd, C), _vec(bd, C)]

    return pl.pallas_call(
        functools.partial(_bottleneck_tail_kernel, has_down=has_down),
        out_shape=jax.ShapeDtypeStruct((M, C), out_dtype),
        grid=grid,
        in_specs=in_specs,
        out_specs=pl.BlockSpec((bm, C), lambda i: (i, 0)),
        compiler_params=pltpu.CompilerParams(dimension_semantics=("parallel",)),
    )(*args)


# ---------------------------------------------------------------------------
# Conv / pool built on the kernels (patch extraction stays as JAX glue)
# ---------------------------------------------------------------------------

def extract_patches(x, kh, kw, stride, pad, pad_value=0.0):
    """x: [N, H, W, C] -> patches [N, OH, OW, kh, kw, C]."""
    N, H, W, C = x.shape
    xp = jnp.pad(x, ((0, 0), (pad, pad), (pad, pad), (0, 0)),
                 constant_values=pad_value)
    OH = (H + 2 * pad - kh) // stride + 1
    OW = (W + 2 * pad - kw) // stride + 1
    rows = []
    for i in range(kh):
        cols = []
        for j in range(kw):
            cols.append(xp[:, i:i + stride * OH:stride, j:j + stride * OW:stride, :])
        rows.append(jnp.stack(cols, axis=3))          # [N, OH, OW, kw, C]
    return jnp.stack(rows, axis=3)                    # [N, OH, OW, kh, kw, C]


def conv_bn(x, w, scale, bias, *, stride, pad, relu, out_dtype=jnp.bfloat16):
    """Fused conv (dense HWIO weight) + folded BN (+ReLU).

    x: [N, H, W, Cin], w: [kh, kw, Cin, Cout] -> [N, OH, OW, Cout].
    """
    kh, kw, cin, cout = w.shape
    N, H, W, C = x.shape
    assert C == cin
    if kh == 1 and kw == 1 and pad == 0:
        # 1x1 conv: no patch extraction, just (strided) reshape.
        xs = x if stride == 1 else x[:, ::stride, ::stride, :]
        OH, OW = xs.shape[1], xs.shape[2]
        a = xs.reshape(N * OH * OW, cin)
    else:
        # TODO(synk): replace HBM im2col with in-kernel halo-tile patch construction
        # (or kh*kw shifted matmuls accumulated in VMEM scratch) at real widths.
        patches = extract_patches(x, kh, kw, stride, pad)
        OH, OW = patches.shape[1], patches.shape[2]
        a = patches.reshape(N * OH * OW, kh * kw * cin)
    out = matmul_bn_act(a, w.reshape(kh * kw * cin, cout), scale, bias,
                        relu=relu, out_dtype=out_dtype)
    return out.reshape(N, OH, OW, cout)


def maxpool2d(x, k, stride, pad):
    """3x3/2 max pool.  Shifted views are cheap XLA slices; the k*k reduction is
    a single Pallas kernel with a lane-dense [M, C] output."""
    N, H, W, C = x.shape
    xp = jnp.pad(x, ((0, 0), (pad, pad), (pad, pad), (0, 0)),
                 constant_values=-jnp.inf)
    OH = (H + 2 * pad - k) // stride + 1
    OW = (W + 2 * pad - k) // stride + 1
    M = N * OH * OW
    views = []
    for i in range(k):
        for j in range(k):
            views.append(
                xp[:, i:i + stride * OH:stride, j:j + stride * OW:stride, :]
                .reshape(M, C))
    p = jnp.stack(views, axis=0)                      # [k*k, M, C] (window axis leading)
    out = pl.pallas_call(
        functools.partial(_maxpool_kernel, kk=k * k),
        out_shape=jax.ShapeDtypeStruct((M, C), x.dtype),
        grid=(1,),
        in_specs=[pl.BlockSpec((k * k, M, C), lambda i: (0, 0, 0))],
        out_specs=pl.BlockSpec((M, C), lambda i: (0, 0)),
    )(p)
    return out.reshape(N, OH, OW, C)


# ---------------------------------------------------------------------------
# Parameter preparation (de-group + channel-pad; trace-time, constant-folded)
# ---------------------------------------------------------------------------

def _grouped_to_dense(w, groups):
    """Grouped HWIO weight [kh, kw, cin_g, cout] -> block-diagonal dense
    [kh, kw, cin, cout] with PyTorch grouped-conv semantics (group-major channels)."""
    kh, kw, cin_g, cout = w.shape
    cout_g = cout // groups
    cin = cin_g * groups
    dense = jnp.zeros((kh, kw, cin, cout), w.dtype)
    for g in range(groups):
        dense = dense.at[
            :, :, g * cin_g:(g + 1) * cin_g, g * cout_g:(g + 1) * cout_g
        ].set(w[:, :, :, g * cout_g:(g + 1) * cout_g])
    return dense


def _prepare_internal(params):
    """Pad all weights / BN params to CPAD output channels (zero padding, so padded
    lanes stay exactly zero through the whole network)."""
    def pad_vec(v):
        return jnp.pad(v, (0, CPAD - v.shape[0]))

    def pad_w(w, pad_cin):
        kh, kw, cin, cout = w.shape
        cin_to = CPAD if pad_cin else cin
        return jnp.pad(w, ((0, 0), (0, 0), (0, cin_to - cin), (0, CPAD - cout)))

    def prep_block(b, has_down):
        q = {
            "w1": pad_w(b["w1"], True),
            "bn1_s": pad_vec(b["bn1_s"]), "bn1_b": pad_vec(b["bn1_b"]),
            "w2": pad_w(_grouped_to_dense(b["w2"], GROUPS), True),
            "bn2_s": pad_vec(b["bn2_s"]), "bn2_b": pad_vec(b["bn2_b"]),
            "w3": pad_w(b["w3"], True),
            "bn3_s": pad_vec(b["bn3_s"]), "bn3_b": pad_vec(b["bn3_b"]),
        }
        if has_down:
            q["wd"] = pad_w(b["wd"], True)
            q["bnd_s"] = pad_vec(b["bnd_s"])
            q["bnd_b"] = pad_vec(b["bnd_b"])
        return q

    return {
        "stem_w": pad_w(params["stem_w"], False),   # external input keeps 4 channels
        "stem_bn_s": pad_vec(params["stem_bn_s"]),
        "stem_bn_b": pad_vec(params["stem_bn_b"]),
        "block1": prep_block(params["block1"], True),
        "block2": prep_block(params["block2"], False),
    }


# ---------------------------------------------------------------------------
# ResNeXt feature path
# ---------------------------------------------------------------------------

def bottleneck(x, p, stride, downsample, final_f32=False):
    """One bottleneck block = 2 Pallas calls:
       (1) 1x1 reduce conv + BN + ReLU
       (2) fused tail: 3x3 conv + BN + ReLU -> 1x1 expand + BN
                       -> shortcut (identity / downsample conv + BN) -> add -> ReLU
    """
    N, H, W, C = x.shape

    # (1) 1x1 reduce.
    y1 = conv_bn(x, p["w1"], p["bn1_s"], p["bn1_b"], stride=1, pad=0, relu=True)

    # (2) fused tail. im2col of y1 for the 3x3 (de-grouped) conv.
    patches = extract_patches(y1, 3, 3, stride, 1)
    OH, OW = patches.shape[1], patches.shape[2]
    M = N * OH * OW
    a = patches.reshape(M, 9 * CPAD)

    xs = x if stride == 1 else x[:, ::stride, ::stride, :]
    xin = xs.reshape(M, CPAD)

    out_dtype = jnp.float32 if final_f32 else jnp.bfloat16
    if downsample:
        out = bottleneck_tail(
            a, p["w2"].reshape(9 * CPAD, CPAD), p["bn2_s"], p["bn2_b"],
            p["w3"].reshape(CPAD, CPAD), p["bn3_s"], p["bn3_b"], xin,
            wd=p["wd"].reshape(CPAD, CPAD), sd=p["bnd_s"], bd=p["bnd_b"],
            out_dtype=out_dtype)
    else:
        out = bottleneck_tail(
            a, p["w2"].reshape(9 * CPAD, CPAD), p["bn2_s"], p["bn2_b"],
            p["w3"].reshape(CPAD, CPAD), p["bn3_s"], p["bn3_b"], xin,
            out_dtype=out_dtype)
    return out.reshape(N, OH, OW, CPAD)


def resnext_features(x_nchw, params):
    p = _prepare_internal(params)
    # NCHW (PyTorch) -> NHWC (kernel layout)
    x = jnp.transpose(x_nchw, (0, 2, 3, 1)).astype(jnp.float32)
    # stem: 7x7/2 conv + BN + ReLU (one fused kernel), then 3x3/2 maxpool
    x = conv_bn(x, p["stem_w"], p["stem_bn_s"], p["stem_bn_b"],
                stride=2, pad=3, relu=True)
    x = maxpool2d(x, 3, 2, 1)
    # residual stages (scaled down)
    # TODO(synk): longer term, fuse the 1x1 reduce into the tail kernel too by
    # building the 3x3 halo taps in VMEM (pltpu.emit_pipeline over M-tiles).
    x = bottleneck(x, p["block1"], stride=1, downsample=True)
    x = bottleneck(x, p["block2"], stride=1, downsample=False, final_f32=True)
    # drop internal lane-padding channels, NHWC -> NCHW (features() convention)
    x = x[..., :FEAT_C]
    return jnp.transpose(x, (0, 3, 1, 2))


# ---------------------------------------------------------------------------
# Deterministic parameter init (synthetic; no checkpoint loading)
# ---------------------------------------------------------------------------

def init_params(key):
    keys = iter(jax.random.split(key, 64))

    def conv_w(shape, scale=0.1):
        return jax.random.normal(next(keys), shape, jnp.float32) * scale

    def bn_params(c, eps=1e-5):
        gamma = jax.random.uniform(next(keys), (c,), jnp.float32, 0.5, 1.5)
        beta = jax.random.normal(next(keys), (c,), jnp.float32) * 0.1
        mean = jax.random.normal(next(keys), (c,), jnp.float32) * 0.1
        var = jax.random.uniform(next(keys), (c,), jnp.float32, 0.5, 1.5)
        scale = gamma / jnp.sqrt(var + eps)          # folded eval-mode BN
        bias = beta - mean * scale
        return scale, bias

    p = {}
    p["stem_w"] = conv_w((7, 7, 4, 16))
    p["stem_bn_s"], p["stem_bn_b"] = bn_params(16)

    b1 = {}
    b1["w1"] = conv_w((1, 1, 16, 32))
    b1["bn1_s"], b1["bn1_b"] = bn_params(32)
    b1["w2"] = conv_w((3, 3, 32 // GROUPS, 32))      # grouped 3x3 (raw form)
    b1["bn2_s"], b1["bn2_b"] = bn_params(32)
    b1["w3"] = conv_w((1, 1, 32, 64))
    b1["bn3_s"], b1["bn3_b"] = bn_params(64)
    b1["wd"] = conv_w((1, 1, 16, 64))                # downsample shortcut
    b1["bnd_s"], b1["bnd_b"] = bn_params(64)
    p["block1"] = b1

    b2 = {}
    b2["w1"] = conv_w((1, 1, 64, 32))
    b2["bn1_s"], b2["bn1_b"] = bn_params(32)
    b2["w2"] = conv_w((3, 3, 32 // GROUPS, 32))
    b2["bn2_s"], b2["bn2_b"] = bn_params(32)
    b2["w3"] = conv_w((1, 1, 32, 64))
    b2["bn3_s"], b2["bn3_b"] = bn_params(64)
    p["block2"] = b2

    return p


if __name__ == "__main__":
    key = jax.random.PRNGKey(0)
    kx, kp = jax.random.split(key)
    x = jax.random.normal(kx, (2, 4, 16, 16), jnp.float32)   # NCHW, like PyTorch
    params = init_params(kp)

    feats = jax.jit(lambda inp: resnext_features(inp, params))(x)
    feats = jax.block_until_ready(feats)

    assert feats.shape == (2, 64, 4, 4), feats.shape
    assert feats.dtype == jnp.float32
    assert bool(jnp.all(jnp.isfinite(feats)))
    print("KERNEL_OK")
</pallas_src>

<mosaic_0001>
module attributes {stable_mosaic.version = 11 : i64} {
  func.func @_matmul_bn_act_kernel(%arg0: i32, %arg1: memref<128x256xbf16, #tpu.memory_space<vmem>>, %arg2: memref<256x128xbf16, #tpu.memory_space<vmem>>, %arg3: memref<1x128xf32, #tpu.memory_space<vmem>>, %arg4: memref<1x128xf32, #tpu.memory_space<vmem>>, %arg5: memref<128x128xbf16, #tpu.memory_space<vmem>>) attributes {dimension_semantics = [#tpu.dimension_semantics<parallel>], iteration_bounds = array<i64: 1>, scalar_prefetch = 0 : i64, scratch_operands = 0 : i64, tpu.core_type = #tpu.core_type<tc>, window_params = [{transform_indices = @transform_0, window_bounds = array<i64: 128, 256>}, {pipeline_mode = #tpu.pipeline_mode<synchronous>, transform_indices = @transform_1, window_bounds = array<i64: 256, 128>}, {pipeline_mode = #tpu.pipeline_mode<synchronous>, transform_indices = @transform_2, window_bounds = array<i64: 1, 128>}, {pipeline_mode = #tpu.pipeline_mode<synchronous>, transform_indices = @transform_3, window_bounds = array<i64: 1, 128>}, {transform_indices = @transform_4, window_bounds = array<i64: 128, 128>}]} {
    %c0 = arith.constant 0 : index
    %c0_0 = arith.constant 0 : index
    %0 = vector.load %arg1[%c0, %c0_0] : memref<128x256xbf16, #tpu.memory_space<vmem>>, vector<128x256xbf16>
    %c0_1 = arith.constant 0 : index
    %c0_2 = arith.constant 0 : index
    %1 = vector.load %arg2[%c0_1, %c0_2] : memref<256x128xbf16, #tpu.memory_space<vmem>>, vector<256x128xbf16>
    %cst = arith.constant dense<0.000000e+00> : vector<128x128xf32>
    %2 = tpu.matmul %0, %1, %cst {dimension_numbers = #tpu.dot_dimension_numbers<[1], [0], [0], [1], [0, 0, 1, 1], [], []>} : vector<128x256xbf16>, vector<256x128xbf16>, vector<128x128xf32> -> vector<128x128xf32>
    %c0_3 = arith.constant 0 : index
    %c0_4 = arith.constant 0 : index
    %3 = vector.load %arg3[%c0_3, %c0_4] : memref<1x128xf32, #tpu.memory_space<vmem>>, vector<1x128xf32>
    %4 = vector.broadcast %3 : vector<1x128xf32> to vector<128x128xf32>
    %5 = arith.mulf %2, %4 : vector<128x128xf32>
    %c0_5 = arith.constant 0 : index
    %c0_6 = arith.constant 0 : index
    %6 = vector.load %arg4[%c0_5, %c0_6] : memref<1x128xf32, #tpu.memory_space<vmem>>, vector<1x128xf32>
    %7 = vector.broadcast %6 : vector<1x128xf32> to vector<128x128xf32>
    %8 = arith.addf %5, %7 : vector<128x128xf32>
    %cst_7 = arith.constant 0.000000e+00 : f32
    %9 = vector.broadcast %cst_7 : f32 to vector<128x128xf32>
    %10 = arith.maximumf %8, %9 : vector<128x128xf32>
    %11 = arith.truncf %10 : vector<128x128xf32> to vector<128x128xbf16>
    %c0_8 = arith.constant 0 : index
    %c0_9 = arith.constant 0 : index
    %12 = vector.load %arg5[%c0_8, %c0_9] : memref<128x128xbf16, #tpu.memory_space<vmem>>, vector<128x128xbf16>
    tpu.vector_store %arg5[%c0_8, %c0_9], %11 {strides = array<i32>} : memref<128x128xbf16, #tpu.memory_space<vmem>>, vector<128x128xbf16>,
    return
  }
  func.func @transform_0(%arg0: i32) -> (i32, i32) {
    %c0_i32 = arith.constant 0 : i32
    %c0_i32_0 = arith.constant 0 : i32
    return %arg0, %c0_i32 : i32, i32
  }
  func.func @transform_1(%arg0: i32) -> (i32, i32) {
    %c0_i32 = arith.constant 0 : i32
    %c0_i32_0 = arith.constant 0 : i32
    %c0_i32_1 = arith.constant 0 : i32
    return %c0_i32, %c0_i32_0 : i32, i32
  }
  func.func @transform_2(%arg0: i32) -> (i32, i32) {
    %c0_i32 = arith.constant 0 : i32
    %c0_i32_0 = arith.constant 0 : i32
    %c0_i32_1 = arith.constant 0 : i32
    return %c0_i32, %c0_i32_0 : i32, i32
  }
  func.func @transform_3(%arg0: i32) -> (i32, i32) {
    %c0_i32 = arith.constant 0 : i32
    %c0_i32_0 = arith.constant 0 : i32
    %c0_i32_1 = arith.constant 0 : i32
    return %c0_i32, %c0_i32_0 : i32, i32
  }
  func.func @transform_4(%arg0: i32) -> (i32, i32) {
    %c0_i32 = arith.constant 0 : i32
    %c0_i32_0 = arith.constant 0 : i32
    return %arg0, %c0_i32 : i32, i32
  }
}

module attributes {stable_mosaic.version = 11 : i64} {
  func.func @_maxpool_kernel(%arg0: i32, %arg1: memref<9x32x128xbf16, #tpu.memory_space<vmem>>, %arg2: memref<32x128xbf16, #tpu.memory_space<vmem>>) attributes {dimension_semantics = [#tpu.dimension_semantics<arbitrary>], iteration_bounds = array<i64: 1>, scalar_prefetch = 0 : i64, scratch_operands = 0 : i64, tpu.core_type = #tpu.core_type<tc>, window_params = [{pipeline_mode = #tpu.pipeline_mode<synchronous>, transform_indices = @transform_0, window_bounds = array<i64: 9, 32, 128>}, {pipeline_mode = #tpu.pipeline_mode<synchronous>, transform_indices = @transform_1, window_bounds = array<i64: 32, 128>}]} {
    %c0 = arith.constant 0 : index
    %c0_0 = arith.constant 0 : index
    %c0_1 = arith.constant 0 : index
    %0 = vector.load %arg1[%c0, %c0_0, %c0_1] : memref<9x32x128xbf16, #tpu.memory_space<vmem>>, vector<1x32x128xbf16>
    %1 = vector.shape_cast %0 : vector<1x32x128xbf16> to vector<32x128xbf16>
    %2 = arith.extf %1 : vector<32x128xbf16> to vector<32x128xf32>
    %c1 = arith.constant 1 : index
    %c0_2 = arith.constant 0 : index
    %c0_3 = arith.constant 0 : index
    %3 = vector.load %arg1[%c1, %c0_2, %c0_3] : memref<9x32x128xbf16, #tpu.memory_space<vmem>>, vector<1x32x128xbf16>
    %4 = vector.shape_cast %3 : vector<1x32x128xbf16> to vector<32x128xbf16>
    %5 = arith.extf %4 : vector<32x128xbf16> to vector<32x128xf32>
    %6 = arith.maximumf %2, %5 : vector<32x128xf32>
    %c2 = arith.constant 2 : index
    %c0_4 = arith.constant 0 : index
    %c0_5 = arith.constant 0 : index
    %7 = vector.load %arg1[%c2, %c0_4, %c0_5] : memref<9x32x128xbf16, #tpu.memory_space<vmem>>, vector<1x32x128xbf16>
    %8 = vector.shape_cast %7 : vector<1x32x128xbf16> to vector<32x128xbf16>
    %9 = arith.extf %8 : vector<32x128xbf16> to vector<32x128xf32>
    %10 = arith.maximumf %6, %9 : vector<32x128xf32>
    %c3 = arith.constant 3 : index
    %c0_6 = arith.constant 0 : index
    %c0_7 = arith.constant 0 : index
    %11 = vector.load %arg1[%c3, %c0_6, %c0_7] : memref<9x32x128xbf16, #tpu.memory_space<vmem>>, vector<1x32x128xbf16>
    %12 = vector.shape_cast %11 : vector<1x32x128xbf16> to vector<32x128xbf16>
    %13 = arith.extf %12 : vector<32x128xbf16> to vector<32x128xf32>
    %14 = arith.maximumf %10, %13 : vector<32x128xf32>
    %c4 = arith.constant 4 : index
    %c0_8 = arith.constant 0 : index
    %c0_9 = arith.constant 0 : index
    %15 = vector.load %arg1[%c4, %c0_8, %c0_9] : memref<9x32x128xbf16, #tpu.memory_space<vmem>>, vector<1x32x128xbf16>
    %16 = vector.shape_cast %15 : vector<1x32x128xbf16> to vector<32x128xbf16>
    %17 = arith.extf %16 : vector<32x128xbf16> to vector<32x128xf32>
    %18 = arith.maximumf %14, %17 : vector<32x128xf32>
    %c5 = arith.constant 5 : index
    %c0_10 = arith.constant 0 : index
    %c0_11 = arith.constant 0 : index
    %19 = vector.load %arg1[%c5, %c0_10, %c0_11] : memref<9x32x128xbf16, #tpu.memory_space<vmem>>, vector<1x32x128xbf16>
    %20 = vector.shape_cast %19 : vector<1x32x128xbf16> to vector<32x128xbf16>
    %21 = arith.extf %20 : vector<32x128xbf16> to vector<32x128xf32>
    %22 = arith.maximumf %18, %21 : vector<32x128xf32>
    %c6 = arith.constant 6 : index
    %c0_12 = arith.constant 0 : index
    %c0_13 = arith.constant 0 : index
    %23 = vector.load %arg1[%c6, %c0_12, %c0_13] : memref<9x32x128xbf16, #tpu.memory_space<vmem>>, vector<1x32x128xbf16>
    %24 = vector.shape_cast %23 : vector<1x32x128xbf16> to vector<32x128xbf16>
    %25 = arith.extf %24 : vector<32x128xbf16> to vector<32x128xf32>
    %26 = arith.maximumf %22, %25 : vector<32x128xf32>
    %c7 = arith.constant 7 : index
    %c0_14 = arith.constant 0 : index
    %c0_15 = arith.constant 0 : index
    %27 = vector.load %arg1[%c7, %c0_14, %c0_15] : memref<9x32x128xbf16, #tpu.memory_space<vmem>>, vector<1x32x128xbf16>
    %28 = vector.shape_cast %27 : vector<1x32x128xbf16> to vector<32x128xbf16>
    %29 = arith.extf %28 : vector<32x128xbf16> to vector<32x128xf32>
    %30 = arith.maximumf %26, %29 : vector<32x128xf32>
    %c8 = arith.constant 8 : index
    %c0_16 = arith.constant 0 : index
    %c0_17 = arith.constant 0 : index
    %31 = vector.load %arg1[%c8, %c0_16, %c0_17] : memref<9x32x128xbf16, #tpu.memory_space<vmem>>, vector<1x32x128xbf16>
    %32 = vector.shape_cast %31 : vector<1x32x128xbf16> to vector<32x128xbf16>
    %33 = arith.extf %32 : vector<32x128xbf16> to vector<32x128xf32>
    %34 = arith.maximumf %30, %33 : vector<32x128xf32>
    %35 = arith.truncf %34 : vector<32x128xf32> to vector<32x128xbf16>
    %c0_18 = arith.constant 0 : index
    %c0_19 = arith.constant 0 : index
    %36 = vector.load %arg2[%c0_18, %c0_19] : memref<32x128xbf16, #tpu.memory_space<vmem>>, vector<32x128xbf16>
    tpu.vector_store %arg2[%c0_18, %c0_19], %35 {strides = array<i32>} : memref<32x128xbf16, #tpu.memory_space<vmem>>, vector<32x128xbf16>,
    return
  }
  func.func @transform_0(%arg0: i32) -> (i32, i32, i32) {
    %c0_i32 = arith.constant 0 : i32
    %c0_i32_0 = arith.constant 0 : i32
    %c0_i32_1 = arith.constant 0 : i32
    %c0_i32_2 = arith.constant 0 : i32
    return %c0_i32, %c0_i32_0, %c0_i32_1 : i32, i32, i32
  }
  func.func @transform_1(%arg0: i32) -> (i32, i32) {
    %c0_i32 = arith.constant 0 : i32
    %c0_i32_0 = arith.constant 0 : i32
    %c0_i32_1 = arith.constant 0 : i32
    return %c0_i32, %c0_i32_0 : i32, i32
  }
}

module attributes {stable_mosaic.version = 11 : i64} {
  func.func @_matmul_bn_act_kernel(%arg0: i32, %arg1: memref<32x128xbf16, #tpu.memory_space<vmem>>, %arg2: memref<128x128xbf16, #tpu.memory_space<vmem>>, %arg3: memref<1x128xf32, #tpu.memory_space<vmem>>, %arg4: memref<1x128xf32, #tpu.memory_space<vmem>>, %arg5: memref<32x128xbf16, #tpu.memory_space<vmem>>) attributes {dimension_semantics = [#tpu.dimension_semantics<parallel>], iteration_bounds = array<i64: 1>, scalar_prefetch = 0 : i64, scratch_operands = 0 : i64, tpu.core_type = #tpu.core_type<tc>, window_params = [{transform_indices = @transform_0, window_bounds = array<i64: 32, 128>}, {pipeline_mode = #tpu.pipeline_mode<synchronous>, transform_indices = @transform_1, window_bounds = array<i64: 128, 128>}, {pipeline_mode = #tpu.pipeline_mode<synchronous>, transform_indices = @transform_2, window_bounds = array<i64: 1, 128>}, {pipeline_mode = #tpu.pipeline_mode<synchronous>, transform_indices = @transform_3, window_bounds = array<i64: 1, 128>}, {transform_indices = @transform_4, window_bounds = array<i64: 32, 128>}]} {
    %c0 = arith.constant 0 : index
    %c0_0 = arith.constant 0 : index
    %0 = vector.load %arg1[%c0, %c0_0] : memref<32x128xbf16, #tpu.memory_space<vmem>>, vector<32x128xbf16>
    %c0_1 = arith.constant 0 : index
    %c0_2 = arith.constant 0 : index
    %1 = vector.load %arg2[%c0_1, %c0_2] : memref<128x128xbf16, #tpu.memory_space<vmem>>, vector<128x128xbf16>
    %cst = arith.constant dense<0.000000e+00> : vector<32x128xf32>
    %2 = tpu.matmul %0, %1, %cst {dimension_numbers = #tpu.dot_dimension_numbers<[1], [0], [0], [1], [0, 0, 1, 1], [], []>} : vector<32x128xbf16>, vector<128x128xbf16>, vector<32x128xf32> -> vector<32x128xf32>
    %c0_3 = arith.constant 0 : index
    %c0_4 = arith.constant 0 : index
    %3 = vector.load %arg3[%c0_3, %c0_4] : memref<1x128xf32, #tpu.memory_space<vmem>>, vector<1x128xf32>
    %4 = vector.broadcast %3 : vector<1x128xf32> to vector<32x128xf32>
    %5 = arith.mulf %2, %4 : vector<32x128xf32>
    %c0_5 = arith.constant 0 : index
    %c0_6 = arith.constant 0 : index
    %6 = vector.load %arg4[%c0_5, %c0_6] : memref<1x128xf32, #tpu.memory_space<vmem>>, vector<1x128xf32>
    %7 = vector.broadcast %6 : vector<1x128xf32> to vector<32x128xf32>
    %8 = arith.addf %5, %7 : vector<32x128xf32>
    %cst_7 = arith.constant 0.000000e+00 : f32
    %9 = vector.broadcast %cst_7 : f32 to vector<32x128xf32>
    %10 = arith.maximumf %8, %9 : vector<32x128xf32>
    %11 = arith.truncf %10 : vector<32x128xf32> to vector<32x128xbf16>
    %c0_8 = arith.constant 0 : index
    %c0_9 = arith.constant 0 : index
    %12 = vector.load %arg5[%c0_8, %c0_9] : memref<32x128xbf16, #tpu.memory_space<vmem>>, vector<32x128xbf16>
    tpu.vector_store %arg5[%c0_8, %c0_9], %11 {strides = array<i32>} : memref<32x128xbf16, #tpu.memory_space<vmem>>, vector<32x128xbf16>,
    return
  }
  func.func @transform_0(%arg0: i32) -> (i32, i32) {
    %c0_i32 = arith.constant 0 : i32
    %c0_i32_0 = arith.constant 0 : i32
    return %arg0, %c0_i32 : i32, i32
  }
  func.func @transform_1(%arg0: i32) -> (i32, i32) {
    %c0_i32 = arith.constant 0 : i32
    %c0_i32_0 = arith.constant 0 : i32
    %c0_i32_1 = arith.constant 0 : i32
    return %c0_i32, %c0_i32_0 : i32, i32
  }
  func.func @transform_2(%arg0: i32) -> (i32, i32) {
    %c0_i32 = arith.constant 0 : i32
    %c0_i32_0 = arith.constant 0 : i32
    %c0_i32_1 = arith.constant 0 : i32
    return %c0_i32, %c0_i32_0 : i32, i32
  }
  func.func @transform_3(%arg0: i32) -> (i32, i32) {
    %c0_i32 = arith.constant 0 : i32
    %c0_i32_0 = arith.constant 0 : i32
    %c0_i32_1 = arith.constant 0 : i32
    return %c0_i32, %c0_i32_0 : i32, i32
  }
  func.func @transform_4(%arg0: i32) -> (i32, i32) {
    %c0_i32 = arith.constant 0 : i32
    %c0_i32_0 = arith.constant 0 : i32
    return %arg0, %c0_i32 : i32, i32
  }
}

module attributes {stable_mosaic.version = 11 : i64} {
  func.func @_bottleneck_tail_kernel(%arg0: i32, %arg1: memref<32x1152xbf16, #tpu.memory_space<vmem>>, %arg2: memref<1152x128xbf16, #tpu.memory_space<vmem>>, %arg3: memref<1x128xf32, #tpu.memory_space<vmem>>, %arg4: memref<1x128xf32, #tpu.memory_space<vmem>>, %arg5: memref<128x128xbf16, #tpu.memory_space<vmem>>, %arg6: memref<1x128xf32, #tpu.memory_space<vmem>>, %arg7: memref<1x128xf32, #tpu.memory_space<vmem>>, %arg8: memref<32x128xbf16, #tpu.memory_space<vmem>>, %arg9: memref<32x128xf32, #tpu.memory_space<vmem>>) attributes {dimension_semantics = [#tpu.dimension_semantics<parallel>], iteration_bounds = array<i64: 1>, scalar_prefetch = 0 : i64, scratch_operands = 0 : i64, tpu.core_type = #tpu.core_type<tc>, window_params = [{transform_indices = @transform_0, window_bounds = array<i64: 32, 1152>}, {pipeline_mode = #tpu.pipeline_mode<synchronous>, transform_indices = @transform_1, window_bounds = array<i64: 1152, 128>}, {pipeline_mode = #tpu.pipeline_mode<synchronous>, transform_indices = @transform_2, window_bounds = array<i64: 1, 128>}, {pipeline_mode = #tpu.pipeline_mode<synchronous>, transform_indices = @transform_3, window_bounds = array<i64: 1, 128>}, {pipeline_mode = #tpu.pipeline_mode<synchronous>, transform_indices = @transform_4, window_bounds = array<i64: 128, 128>}, {pipeline_mode = #tpu.pipeline_mode<synchronous>, transform_indices = @transform_5, window_bounds = array<i64: 1, 128>}, {pipeline_mode = #tpu.pipeline_mode<synchronous>, transform_indices = @transform_6, window_bounds = array<i64: 1, 128>}, {transform_indices = @transform_7, window_bounds = array<i64: 32, 128>}, {transform_indices = @transform_8, window_bounds = array<i64: 32, 128>}]} {
    %c0 = arith.constant 0 : index
    %c0_0 = arith.constant 0 : index
    %0 = vector.load %arg1[%c0, %c0_0] : memref<32x1152xbf16, #tpu.memory_space<vmem>>, vector<32x1152xbf16>
    %c0_1 = arith.constant 0 : index
    %c0_2 = arith.constant 0 : index
    %1 = vector.load %arg2[%c0_1, %c0_2] : memref<1152x128xbf16, #tpu.memory_space<vmem>>, vector<1152x128xbf16>
    %cst = arith.constant dense<0.000000e+00> : vector<32x128xf32>
    %2 = tpu.matmul %0, %1, %cst {dimension_numbers = #tpu.dot_dimension_numbers<[1], [0], [0], [1], [0, 0, 1, 1], [], []>} : vector<32x1152xbf16>, vector<1152x128xbf16>, vector<32x128xf32> -> vector<32x128xf32>
    %c0_3 = arith.constant 0 : index
    %c0_4 = arith.constant 0 : index
    %3 = vector.load %arg3[%c0_3, %c0_4] : memref<1x128xf32, #tpu.memory_space<vmem>>, vector<1x128xf32>
    %4 = vector.broadcast %3 : vector<1x128xf32> to vector<32x128xf32>
    %5 = arith.mulf %2, %4 : vector<32x128xf32>
    %c0_5 = arith.constant 0 : index
    %c0_6 = arith.constant 0 : index
    %6 = vector.load %arg4[%c0_5, %c0_6] : memref<1x128xf32, #tpu.memory_space<vmem>>, vector<1x128xf32>
    %7 = vector.broadcast %6 : vector<1x128xf32> to vector<32x128xf32>
    %8 = arith.addf %5, %7 : vector<32x128xf32>
    %cst_7 = arith.constant 0.000000e+00 : f32
    %9 = vector.broadcast %cst_7 : f32 to vector<32x128xf32>
    %10 = arith.maximumf %8, %9 : vector<32x128xf32>
    %11 = arith.truncf %10 : vector<32x128xf32> to vector<32x128xbf16>
    %c0_8 = arith.constant 0 : index
    %c0_9 = arith.constant 0 : index
    %12 = vector.load %arg5[%c0_8, %c0_9] : memref<128x128xbf16, #tpu.memory_space<vmem>>, vector<128x128xbf16>
    %cst_10 = arith.constant dense<0.000000e+00> : vector<32x128xf32>
    %13 = tpu.matmul %11, %12, %cst_10 {dimension_numbers = #tpu.dot_dimension_numbers<[1], [0], [0], [1], [0, 0, 1, 1], [], []>} : vector<32x128xbf16>, vector<128x128xbf16>, vector<32x128xf32> -> vector<32x128xf32>
    %c0_11 = arith.constant 0 : index
    %c0_12 = arith.constant 0 : index
    %14 = vector.load %arg6[%c0_11, %c0_12] : memref<1x128xf32, #tpu.memory_space<vmem>>, vector<1x128xf32>
    %15 = vector.broadcast %14 : vector<1x128xf32> to vector<32x128xf32>
    %16 = arith.mulf %13, %15 : vector<32x128xf32>
    %c0_13 = arith.constant 0 : index
    %c0_14 = arith.constant 0 : index
    %17 = vector.load %arg7[%c0_13, %c0_14] : memref<1x128xf32, #tpu.memory_space<vmem>>, vector<1x128xf32>
    %18 = vector.broadcast %17 : vector<1x128xf32> to vector<32x128xf32>
    %19 = arith.addf %16, %18 : vector<32x128xf32>
    %c0_15 = arith.constant 0 : index
    %c0_16 = arith.constant 0 : index
    %20 = vector.load %arg8[%c0_15, %c0_16] : memref<32x128xbf16, #tpu.memory_space<vmem>>, vector<32x128xbf16>
    %21 = arith.extf %20 : vector<32x128xbf16> to vector<32x128xf32>
    %22 = arith.addf %19, %21 : vector<32x128xf32>
    %cst_17 = arith.constant 0.000000e+00 : f32
    %23 = vector.broadcast %cst_17 : f32 to vector<32x128xf32>
    %24 = arith.maximumf %22, %23 : vector<32x128xf32>
    %c0_18 = arith.constant 0 : index
    %c0_19 = arith.constant 0 : index
    %25 = vector.load %arg9[%c0_18, %c0_19] : memref<32x128xf32, #tpu.memory_space<vmem>>, vector<32x128xf32>
    tpu.vector_store %arg9[%c0_18, %c0_19], %24 {strides = array<i32>} : memref<32x128xf32, #tpu.memory_space<vmem>>, vector<32x128xf32>,
    return
  }
  func.func @transform_0(%arg0: i32) -> (i32, i32) {
    %c0_i32 = arith.constant 0 : i32
    %c0_i32_0 = arith.constant 0 : i32
    return %arg0, %c0_i32 : i32, i32
  }
  func.func @transform_1(%arg0: i32) -> (i32, i32) {
    %c0_i32 = arith.constant 0 : i32
    %c0_i32_0 = arith.constant 0 : i32
    %c0_i32_1 = arith.constant 0 : i32
    return %c0_i32, %c0_i32_0 : i32, i32
  }
  func.func @transform_2(%arg0: i32) -> (i32, i32) {
    %c0_i32 = arith.constant 0 : i32
    %c0_i32_0 = arith.constant 0 : i32
    %c0_i32_1 = arith.constant 0 : i32
    return %c0_i32, %c0_i32_0 : i32, i32
  }
  func.func @transform_3(%arg0: i32) -> (i32, i32) {
    %c0_i32 = arith.constant 0 : i32
    %c0_i32_0 = arith.constant 0 : i32
    %c0_i32_1 = arith.constant 0 : i32
    return %c0_i32, %c0_i32_0 : i32, i32
  }
  func.func @transform_4(%arg0: i32) -> (i32, i32) {
    %c0_i32 = arith.constant 0 : i32
    %c0_i32_0 = arith.constant 0 : i32
    %c0_i32_1 = arith.constant 0 : i32
    return %c0_i32, %c0_i32_0 : i32, i32
  }
  func.func @transform_5(%arg0: i32) -> (i32, i32) {
    %c0_i32 = arith.constant 0 : i32
    %c0_i32_0 = arith.constant 0 : i32
    %c0_i32_1 = arith.constant 0 : i32
    return %c0_i32, %c0_i32_0 : i32, i32
  }
  func.func @transform_6(%arg0: i32) -> (i32, i32) {
    %c0_i32 = arith.constant 0 : i32
    %c0_i32_0 = arith.constant 0 : i32
    %c0_i32_1 = arith.constant 0 : i32
    return %c0_i32, %c0_i32_0 : i32, i32
  }
  func.func @transform_7(%arg0: i32) -> (i32, i32) {
    %c0_i32 = arith.constant 0 : i32
    %c0_i32_0 = arith.constant 0 : i32
    return %arg0, %c0_i32 : i32, i32
  }
  func.func @transform_8(%arg0: i32) -> (i32, i32) {
    %c0_i32 = arith.constant 0 : i32
    %c0_i32_0 = arith.constant 0 : i32
    return %arg0, %c0_i32 : i32, i32
  }
}

module attributes {stable_mosaic.version = 11 : i64} {
  func.func @_bottleneck_tail_kernel(%arg0: i32, %arg1: memref<32x1152xbf16, #tpu.memory_space<vmem>>, %arg2: memref<1152x128xbf16, #tpu.memory_space<vmem>>, %arg3: memref<1x128xf32, #tpu.memory_space<vmem>>, %arg4: memref<1x128xf32, #tpu.memory_space<vmem>>, %arg5: memref<128x128xbf16, #tpu.memory_space<vmem>>, %arg6: memref<1x128xf32, #tpu.memory_space<vmem>>, %arg7: memref<1x128xf32, #tpu.memory_space<vmem>>, %arg8: memref<32x128xbf16, #tpu.memory_space<vmem>>, %arg9: memref<128x128xbf16, #tpu.memory_space<vmem>>, %arg10: memref<1x128xf32, #tpu.memory_space<vmem>>, %arg11: memref<1x128xf32, #tpu.memory_space<vmem>>, %arg12: memref<32x128xbf16, #tpu.memory_space<vmem>>) attributes {dimension_semantics = [#tpu.dimension_semantics<parallel>], iteration_bounds = array<i64: 1>, scalar_prefetch = 0 : i64, scratch_operands = 0 : i64, tpu.core_type = #tpu.core_type<tc>, window_params = [{transform_indices = @transform_0, window_bounds = array<i64: 32, 1152>}, {pipeline_mode = #tpu.pipeline_mode<synchronous>, transform_indices = @transform_1, window_bounds = array<i64: 1152, 128>}, {pipeline_mode = #tpu.pipeline_mode<synchronous>, transform_indices = @transform_2, window_bounds = array<i64: 1, 128>}, {pipeline_mode = #tpu.pipeline_mode<synchronous>, transform_indices = @transform_3, window_bounds = array<i64: 1, 128>}, {pipeline_mode = #tpu.pipeline_mode<synchronous>, transform_indices = @transform_4, window_bounds = array<i64: 128, 128>}, {pipeline_mode = #tpu.pipeline_mode<synchronous>, transform_indices = @transform_5, window_bounds = array<i64: 1, 128>}, {pipeline_mode = #tpu.pipeline_mode<synchronous>, transform_indices = @transform_6, window_bounds = array<i64: 1, 128>}, {transform_indices = @transform_7, window_bounds = array<i64: 32, 128>}, {pipeline_mode = #tpu.pipeline_mode<synchronous>, transform_indices = @transform_8, window_bounds = array<i64: 128, 128>}, {pipeline_mode = #tpu.pipeline_mode<synchronous>, transform_indices = @transform_9, window_bounds = array<i64: 1, 128>}, {pipeline_mode = #tpu.pipeline_mode<synchronous>, transform_indices = @transform_10, window_bounds = array<i64: 1, 128>}, {transform_indices = @transform_11, window_bounds = array<i64: 32, 128>}]} {
    %c0 = arith.constant 0 : index
    %c0_0 = arith.constant 0 : index
    %0 = vector.load %arg1[%c0, %c0_0] : memref<32x1152xbf16, #tpu.memory_space<vmem>>, vector<32x1152xbf16>
    %c0_1 = arith.constant 0 : index
    %c0_2 = arith.constant 0 : index
    %1 = vector.load %arg2[%c0_1, %c0_2] : memref<1152x128xbf16, #tpu.memory_space<vmem>>, vector<1152x128xbf16>
    %cst = arith.constant dense<0.000000e+00> : vector<32x128xf32>
    %2 = tpu.matmul %0, %1, %cst {dimension_numbers = #tpu.dot_dimension_numbers<[1], [0], [0], [1], [0, 0, 1, 1], [], []>} : vector<32x1152xbf16>, vector<1152x128xbf16>, vector<32x128xf32> -> vector<32x128xf32>
    %c0_3 = arith.constant 0 : index
    %c0_4 = arith.constant 0 : index
    %3 = vector.load %arg3[%c0_3, %c0_4] : memref<1x128xf32, #tpu.memory_space<vmem>>, vector<1x128xf32>
    %4 = vector.broadcast %3 : vector<1x128xf32> to vector<32x128xf32>
    %5 = arith.mulf %2, %4 : vector<32x128xf32>
    %c0_5 = arith.constant 0 : index
    %c0_6 = arith.constant 0 : index
    %6 = vector.load %arg4[%c0_5, %c0_6] : memref<1x128xf32, #tpu.memory_space<vmem>>, vector<1x128xf32>
    %7 = vector.broadcast %6 : vector<1x128xf32> to vector<32x128xf32>
    %8 = arith.addf %5, %7 : vector<32x128xf32>
    %cst_7 = arith.constant 0.000000e+00 : f32
    %9 = vector.broadcast %cst_7 : f32 to vector<32x128xf32>
    %10 = arith.maximumf %8, %9 : vector<32x128xf32>
    %11 = arith.truncf %10 : vector<32x128xf32> to vector<32x128xbf16>
    %c0_8 = arith.constant 0 : index
    %c0_9 = arith.constant 0 : index
    %12 = vector.load %arg5[%c0_8, %c0_9] : memref<128x128xbf16, #tpu.memory_space<vmem>>, vector<128x128xbf16>
    %cst_10 = arith.constant dense<0.000000e+00> : vector<32x128xf32>
    %13 = tpu.matmul %11, %12, %cst_10 {dimension_numbers = #tpu.dot_dimension_numbers<[1], [0], [0], [1], [0, 0, 1, 1], [], []>} : vector<32x128xbf16>, vector<128x128xbf16>, vector<32x128xf32> -> vector<32x128xf32>
    %c0_11 = arith.constant 0 : index
    %c0_12 = arith.constant 0 : index
    %14 = vector.load %arg6[%c0_11, %c0_12] : memref<1x128xf32, #tpu.memory_space<vmem>>, vector<1x128xf32>
    %15 = vector.broadcast %14 : vector<1x128xf32> to vector<32x128xf32>
    %16 = arith.mulf %13, %15 : vector<32x128xf32>
    %c0_13 = arith.constant 0 : index
    %c0_14 = arith.constant 0 : index
    %17 = vector.load %arg7[%c0_13, %c0_14] : memref<1x128xf32, #tpu.memory_space<vmem>>, vector<1x128xf32>
    %18 = vector.broadcast %17 : vector<1x128xf32> to vector<32x128xf32>
    %19 = arith.addf %16, %18 : vector<32x128xf32>
    %c0_15 = arith.constant 0 : index
    %c0_16 = arith.constant 0 : index
    %20 = vector.load %arg8[%c0_15, %c0_16] : memref<32x128xbf16, #tpu.memory_space<vmem>>, vector<32x128xbf16>
    %c0_17 = arith.constant 0 : index
    %c0_18 = arith.constant 0 : index
    %21 = vector.load %arg9[%c0_17, %c0_18] : memref<128x128xbf16, #tpu.memory_space<vmem>>, vector<128x128xbf16>
    %cst_19 = arith.constant dense<0.000000e+00> : vector<32x128xf32>
    %22 = tpu.matmul %20, %21, %cst_19 {dimension_numbers = #tpu.dot_dimension_numbers<[1], [0], [0], [1], [0, 0, 1, 1], [], []>} : vector<32x128xbf16>, vector<128x128xbf16>, vector<32x128xf32> -> vector<32x128xf32>
    %c0_20 = arith.constant 0 : index
    %c0_21 = arith.constant 0 : index
    %23 = vector.load %arg10[%c0_20, %c0_21] : memref<1x128xf32, #tpu.memory_space<vmem>>, vector<1x128xf32>
    %24 = vector.broadcast %23 : vector<1x128xf32> to vector<32x128xf32>
    %25 = arith.mulf %22, %24 : vector<32x128xf32>
    %c0_22 = arith.constant 0 : index
    %c0_23 = arith.constant 0 : index
    %26 = vector.load %arg11[%c0_22, %c0_23] : memref<1x128xf32, #tpu.memory_space<vmem>>, vector<1x128xf32>
    %27 = vector.broadcast %26 : vector<1x128xf32> to vector<32x128xf32>
    %28 = arith.addf %25, %27 : vector<32x128xf32>
    %29 = arith.addf %19, %28 : vector<32x128xf32>
    %cst_24 = arith.constant 0.000000e+00 : f32
    %30 = vector.broadcast %cst_24 : f32 to vector<32x128xf32>
    %31 = arith.maximumf %29, %30 : vector<32x128xf32>
    %32 = arith.truncf %31 : vector<32x128xf32> to vector<32x128xbf16>
    %c0_25 = arith.constant 0 : index
    %c0_26 = arith.constant 0 : index
    %33 = vector.load %arg12[%c0_25, %c0_26] : memref<32x128xbf16, #tpu.memory_space<vmem>>, vector<32x128xbf16>
    tpu.vector_store %arg12[%c0_25, %c0_26], %32 {strides = array<i32>} : memref<32x128xbf16, #tpu.memory_space<vmem>>, vector<32x128xbf16>,
    return
  }
  func.func @transform_0(%arg0: i32) -> (i32, i32) {
    %c0_i32 = arith.constant 0 : i32
    %c0_i32_0 = arith.constant 0 : i32
    return %arg0, %c0_i32 : i32, i32
  }
  func.func @transform_1(%arg0: i32) -> (i32, i32) {
    %c0_i32 = arith.constant 0 : i32
    %c0_i32_0 = arith.constant 0 : i32
    %c0_i32_1 = arith.constant 0 : i32
    return %c0_i32, %c0_i32_0 : i32, i32
  }
  func.func @transform_2(%arg0: i32) -> (i32, i32) {
    %c0_i32 = arith.constant 0 : i32
    %c0_i32_0 = arith.constant 0 : i32
    %c0_i32_1 = arith.constant 0 : i32
    return %c0_i32, %c0_i32_0 : i32, i32
  }
  func.func @transform_3(%arg0: i32) -> (i32, i32) {
    %c0_i32 = arith.constant 0 : i32
    %c0_i32_0 = arith.constant 0 : i32
    %c0_i32_1 = arith.constant 0 : i32
    return %c0_i32, %c0_i32_0 : i32, i32
  }
  func.func @transform_4(%arg0: i32) -> (i32, i32) {
    %c0_i32 = arith.constant 0 : i32
    %c0_i32_0 = arith.constant 0 : i32
    %c0_i32_1 = arith.constant 0 : i32
    return %c0_i32, %c0_i32_0 : i32, i32
  }
  func.func @transform_5(%arg0: i32) -> (i32, i32) {
    %c0_i32 = arith.constant 0 : i32
    %c0_i32_0 = arith.constant 0 : i32
    %c0_i32_1 = arith.constant 0 : i32
    return %c0_i32, %c0_i32_0 : i32, i32
  }
  func.func @transform_6(%arg0: i32) -> (i32, i32) {
    %c0_i32 = arith.constant 0 : i32
    %c0_i32_0 = arith.constant 0 : i32
    %c0_i32_1 = arith.constant 0 : i32
    return %c0_i32, %c0_i32_0 : i32, i32
  }
  func.func @transform_7(%arg0: i32) -> (i32, i32) {
    %c0_i32 = arith.constant 0 : i32
    %c0_i32_0 = arith.constant 0 : i32
    return %arg0, %c0_i32 : i32, i32
  }
  func.func @transform_8(%arg0: i32) -> (i32, i32) {
    %c0_i32 = arith.constant 0 : i32
    %c0_i32_0 = arith.constant 0 : i32
    %c0_i32_1 = arith.constant 0 : i32
    return %c0_i32, %c0_i32_0 : i32, i32
  }
  func.func @transform_9(%arg0: i32) -> (i32, i32) {
    %c0_i32 = arith.constant 0 : i32
    %c0_i32_0 = arith.constant 0 : i32
    %c0_i32_1 = arith.constant 0 : i32
    return %c0_i32, %c0_i32_0 : i32, i32
  }
  func.func @transform_10(%arg0: i32) -> (i32, i32) {
    %c0_i32 = arith.constant 0 : i32
    %c0_i32_0 = arith.constant 0 : i32
    %c0_i32_1 = arith.constant 0 : i32
    return %c0_i32, %c0_i32_0 : i32, i32
  }
  func.func @transform_11(%arg0: i32) -> (i32, i32) {
    %c0_i32 = arith.constant 0 : i32
    %c0_i32_0 = arith.constant 0 : i32
    return %arg0, %c0_i32 : i32, i32
  }
}

</mosaic_0001>

<bundles_post_ra>
// kernel: _lambda_.6
= control target key start
LH: loop header
LB: loop body
LE: loop exit
PB: predicated region body
PF: predicated region fallthrough
CT: control target
= control target key end

     0   :  { %s905_s1 = inlined_call_operand.vmem [shape: bf16[256,128], index: 1, kind: input, shape index: {}]   ;;  %s906_s0 = inlined_call_operand.vmem [shape: bf16[128,256], index: 0, kind: input, shape index: {}]   ;;  %s907_s2 = inlined_call_operand.vmem [shape: f32[1,128], index: 2, kind: input, shape index: {}]   ;;  %s908_s3 = inlined_call_operand.vmem [shape: f32[1,128], index: 3, kind: input, shape index: {}]   ;;  %s909_s4 = inlined_call_operand.vmem [shape: bf16[128,128], index: 4, kind: output, shape index: {}]  }
   0x1   :  { %v678_v0 = vld [vmem:[%s905_s1 + $0x78] sm:$0xff]   ;;  %v680_v2 = vld [vmem:[%s905_s1 + $0x70] sm:$0xff]   ;;  %v682_v4 = vld [vmem:[%s905_s1 + $0x68] sm:$0xff]  }
   0x2   :  { %v679_v1 = vld [vmem:[%s905_s1 + $0x38] sm:$0xff]   ;;  %598 = vmatprep.subr.bf16.mxu0 %v678_v0  ;;  %662 = vmatprep.subr.bf16.mxu1 %v678_v0  ;;  %v681_v3 = vld [vmem:[%s905_s1 + $0x30] sm:$0xff]   ;;  %v683_v5 = vld [vmem:[%s905_s1 + $0x28] sm:$0xff]  }
   0x3   :  { %599 = vmatpush3.bf16.msra.mxu0 %v679_v1  ;;  %670 = vmatpush3.bf16.msra.mxu1 %v679_v1  ;;  %v684_v6 = vld [vmem:[%s905_s1 + $0x60] sm:$0xff]   ;;  %v686_v8 = vld [vmem:[%s905_s1 + $0x58] sm:$0xff]   ;;  %v688_v10 = vld [vmem:[%s905_s1 + $0x50] sm:$0xff]  }
   0x4   :  { %600 = vmatprep.subr.bf16.mxu0 %v680_v2  ;;  %663 = vmatprep.subr.bf16.mxu1 %v680_v2  ;;  %v685_v7 = vld [vmem:[%s905_s1 + $0x20] sm:$0xff]   ;;  %v687_v9 = vld [vmem:[%s905_s1 + $0x18] sm:$0xff]   ;;  %v689_v13 = vld [vmem:[%s905_s1 + $0x10] sm:$0xff]  }
   0x5   :  { %v696_v11 = vld [vmem:[%s906_s0 + $0x4] ss:$8 sps:$4 sm:$0xff]   ;;  %v694_v18 = vld [vmem:[%s906_s0] ss:$8 sps:$4 sm:$0xff]   ;;  %v700_v20 = vld [vmem:[%s906_s0 + $0x14] ss:$8 sps:$4 sm:$0xff]  }
   0x6   :  { %v699_v12 = vld [vmem:[%s906_s0 + $0x44] ss:$8 sps:$4 sm:$0xff]   ;;  %274 = vmatprep.mubr.bf16.mxu0 %v696_v11  ;;  %v697_v19 = vld [vmem:[%s906_s0 + $0x40] ss:$8 sps:$4 sm:$0xff]   ;;  %v702_v21 = vld [vmem:[%s906_s0 + $0x54] ss:$8 sps:$4 sm:$0xff]  }
   0x7   :  { %601 = vmatpush3.bf16.msra.mxu0 %v681_v3  ;;  %671 = vmatpush3.bf16.msra.mxu1 %v681_v3  ;;  %v690_v14 = vld [vmem:[%s905_s1 + $0x48] sm:$0xff]   ;;  %v692_v16 = vld [vmem:[%s905_s1 + $0x40] sm:$0xff]   ;;  %v704_v22 = vld [vmem:[%s906_s0 + $0x10] ss:$8 sps:$4 sm:$0xff]  }
   0x8   :  { %602 = vmatprep.subr.bf16.mxu0 %v682_v4  ;;  %664 = vmatprep.subr.bf16.mxu1 %v682_v4  ;;  %v691_v15 = vld [vmem:[%s905_s1 + $0x8] sm:$0xff]   ;;  %v693_v17 = vld [vmem:[%s905_s1] sm:$0xff]   ;;  %v705_v23 = vld [vmem:[%s906_s0 + $0x50] ss:$8 sps:$4 sm:$0xff]  }
   0x9   :  { %306 = vmatprep.mubr.bf16.mxu1 %v699_v12  ;;  %v706_v24 = vld [vmem:[%s906_s0 + $0x24] ss:$8 sps:$4 sm:$0xff]   ;;  %v710_v26 = vld [vmem:[%s906_s0 + $0x20] ss:$8 sps:$4 sm:$0xff]   ;;  %v712_v28 = vld [vmem:[%s906_s0 + $0x34] ss:$8 sps:$4 sm:$0xff]  }
   0xa   :  { %v708_v25 = vld [vmem:[%s906_s0 + $0x64] ss:$8 sps:$4 sm:$0xff]   ;;  %v711_v27 = vld [vmem:[%s906_s0 + $0x60] ss:$8 sps:$4 sm:$0xff]   ;;  %v714_v29 = vld [vmem:[%s906_s0 + $0x74] ss:$8 sps:$4 sm:$0xff]  }
   0xb   :  { %603 = vmatpush3.bf16.msra.mxu0 %v683_v5  ;;  %672 = vmatpush3.bf16.msra.mxu1 %v683_v5  ;;  %v716_v30 = vld [vmem:[%s906_s0 + $0x30] ss:$8 sps:$4 sm:$0xff]   ;;  %v842_v35 = vld [vmem:[%s907_s2] ss:$0 sm:$0xff] }
   0xc   :  { %604 = vmatprep.subr.bf16.mxu0 %v684_v6  ;;  %665 = vmatprep.subr.bf16.mxu1 %v684_v6  ;;  %v717_v31 = vld [vmem:[%s906_s0 + $0x70] ss:$8 sps:$4 sm:$0xff]   ;;  %v849_v43 = vld [vmem:[%s908_s3] ss:$0 sm:$0xff] }
   0xf   :  { %605 = vmatpush3.bf16.msra.mxu0 %v685_v7  ;;  %673 = vmatpush3.bf16.msra.mxu1 %v685_v7 }
  0x10   :  { %606 = vmatprep.subr.bf16.mxu0 %v686_v8  ;;  %666 = vmatprep.subr.bf16.mxu1 %v686_v8 }
  0x13   :  { %607 = vmatpush3.bf16.msra.mxu0 %v687_v9  ;;  %674 = vmatpush3.bf16.msra.mxu1 %v687_v9 }
  0x14   :  { %608 = vmatprep.subr.bf16.mxu0 %v688_v10  ;;  %667 = vmatprep.subr.bf16.mxu1 %v688_v10 }
  0x17   :  { %609 = vmatpush3.bf16.msra.mxu0 %v689_v13  ;;  %675 = vmatpush3.bf16.msra.mxu1 %v689_v13 }
  0x18   :  { %610 = vmatprep.subr.bf16.mxu0 %v690_v14  ;;  %668 = vmatprep.subr.bf16.mxu1 %v690_v14 }
  0x1b   :  { %611 = vmatpush3.bf16.msra.mxu0 %v691_v15  ;;  %676 = vmatpush3.bf16.msra.mxu1 %v691_v15 }
  0x1c   :  { %612 = vmatprep.subr.bf16.mxu0 %v692_v16  ;;  %669 = vmatprep.subr.bf16.mxu1 %v692_v16 }
  0x1f   :  { %613 = vmatpush3.bf16.msra.mxu0 %v693_v17  ;;  %677 = vmatpush3.bf16.msra.mxu1 %v693_v17 }
  0x22   :  { %275 = vmatmul.mubr.bf16.vlgmr.msra.gmra.mxu0 %v694_v18  ;;  %307 = vmatmul.mubr.bf16.vlgmr.msra.gmra.mxu1 %v697_v19 }
  0x23   :  { %282 = vmatprep.mubr.bf16.mxu0 %v700_v20  ;;  %314 = vmatprep.mubr.bf16.mxu1 %v702_v21 }
  0x2a   :  { %283 = vmatmul.mubr.bf16.gmra.mxu0 %v704_v22  ;;  %315 = vmatmul.mubr.bf16.gmra.mxu1 %v705_v23 }
  0x2b   :  { %290 = vmatprep.mubr.bf16.mxu0 %v706_v24  ;;  %322 = vmatprep.mubr.bf16.mxu1 %v708_v25 }
  0x32   :  { %291 = vmatmul.mubr.bf16.gmra.mxu0 %v710_v26  ;;  %323 = vmatmul.mubr.bf16.gmra.mxu1 %v711_v27 }
  0x33   :  { %298 = vmatprep.mubr.bf16.mxu0 %v712_v28  ;;  %330 = vmatprep.mubr.bf16.mxu1 %v714_v29 }
  0x3a   :  { %299 = vmatmul.mubr.bf16.gmra.mxu0 %v716_v30  ;;  %331 = vmatmul.mubr.bf16.gmra.mxu1 %v717_v31 }
  0xe2   :  { %v614_v32 = vpop.f32.mrf.mxu0  ;;  %v638_v33 = vpop.f32.mrf.mxu1 }
  0xe4   :  { %v615_v34 = vpop.f32.mrf.mxu0  ;;  %v639_v36 = vpop.f32.mrf.mxu1 }
  0xe5   :  { %v616_v37 = vadd.f32 %v615_v34, %v614_v32  ;;  %v640_v38 = vadd.f32 %v639_v36, %v638_v33 }
  0xe6   :  { %v617_v39 = vpop.f32.mrf.mxu0  ;;  %v641_v40 = vpop.f32.mrf.mxu1 }
  0xe7   :  { %v346_v41 = vmul.f32 %v616_v37, %v842_v35  ;;  %v354_v42 = vmul.f32 %v640_v38, %v842_v35 }
  0xe8   :  { %v618_v44 = vpop.f32.mrf.mxu0  ;;  %v642_v45 = vpop.f32.mrf.mxu1 }
  0xe9   :  { %v619_v46 = vadd.f32 %v618_v44, %v617_v39  ;;  %v643_v47 = vadd.f32 %v642_v45, %v641_v40  ;;  %v369_v50 = vadd.f32 %v849_v43, %v346_v41  ;;  %v377_v51 = vadd.f32 %v849_v43, %v354_v42 }
  0xea   :  { %v620_v48 = vpop.f32.mrf.mxu0  ;;  %v644_v49 = vpop.f32.mrf.mxu1 }
  0xeb   :  { %v347_v52 = vmul.f32 %v619_v46, %v842_v35  ;;  %v355_v53 = vmul.f32 %v643_v47, %v842_v35  ;;  %v385_v62 = vmax.f32 %v369_v50, 0.0  ;;  %v393_v63 = vmax.f32 %v377_v51, 0.0 }
  0xec   :  { %v621_v54 = vpop.f32.mrf.mxu0  ;;  %v645_v55 = vpop.f32.mrf.mxu1 }
  0xed   :  { %v370_v56 = vadd.f32 %v849_v43, %v347_v52  ;;  %v378_v57 = vadd.f32 %v849_v43, %v355_v53  ;;  %v622_v58 = vadd.f32 %v621_v54, %v620_v48  ;;  %v646_v59 = vadd.f32 %v645_v55, %v644_v49 }
  0xee   :  { %v623_v60 = vpop.f32.mrf.mxu0  ;;  %v647_v61 = vpop.f32.mrf.mxu1 }
  0xef   :  { %v386_v0 = vmax.f32 %v370_v56, 0.0  ;;  %v394_v1 = vmax.f32 %v378_v57, 0.0  ;;  %v348_v2 = vmul.f32 %v622_v58, %v842_v35  ;;  %v356_v3 = vmul.f32 %v646_v59, %v842_v35 }
  0xf0   :  { %v624_v4 = vpop.f32.mrf.mxu0  ;;  %v648_v5 = vpop.f32.mrf.mxu1 }
  0xf1   :  { %v554_v6 = vpack.c.bf16 %v386_v0, %v385_v62  ;;  %v574_v7 = vpack.c.bf16 %v394_v1, %v393_v63  ;;  %v625_v8 = vadd.f32 %v624_v4, %v623_v60  ;;  %v649_v9 = vadd.f32 %v648_v5, %v647_v61 }
  0xf2   :  { %v626_v10 = vpop.f32.mrf.mxu0  ;;  %v650_v11 = vpop.f32.mrf.mxu1  ;;  %v371_v12 = vadd.f32 %v849_v43, %v348_v2  ;;  %v379_v13 = vadd.f32 %v849_v43, %v356_v3 }
  0xf3   :  { %555 = vst [vmem:[%s909_s4] sm:$0xff] %v554_v6   ;;  %594 = vst [vmem:[%s909_s4 + $0x20] sm:$0xff] %v574_v7   ;;  %v349_v14 = vmul.f32 %v625_v8, %v842_v35  ;;  %v357_v15 = vmul.f32 %v649_v9, %v842_v35 }
  0xf4   :  { %v627_v16 = vpop.f32.mrf.mxu0  ;;  %v651_v17 = vpop.f32.mrf.mxu1  ;;  %v387_v26 = vmax.f32 %v371_v12, 0.0  ;;  %v395_v27 = vmax.f32 %v379_v13, 0.0 }
  0xf5   :  { %v628_v18 = vadd.f32 %v627_v16, %v626_v10  ;;  %v652_v19 = vadd.f32 %v651_v17, %v650_v11  ;;  %v372_v20 = vadd.f32 %v849_v43, %v349_v14  ;;  %v380_v21 = vadd.f32 %v849_v43, %v357_v15 }
  0xf6   :  { %v629_v22 = vpop.f32.mrf.mxu0  ;;  %v653_v23 = vpop.f32.mrf.mxu1 }
  0xf7   :  { %v350_v24 = vmul.f32 %v628_v18, %v842_v35  ;;  %v358_v25 = vmul.f32 %v652_v19, %v842_v35  ;;  %v388_v28 = vmax.f32 %v372_v20, 0.0  ;;  %v396_v29 = vmax.f32 %v380_v21, 0.0 }
  0xf8   :  { %v630_v30 = vpop.f32.mrf.mxu0  ;;  %v654_v31 = vpop.f32.mrf.mxu1 }
  0xf9   :  { %v631_v32 = vadd.f32 %v630_v30, %v629_v22  ;;  %v655_v33 = vadd.f32 %v654_v31, %v653_v23  ;;  %v559_v34 = vpack.c.bf16 %v388_v28, %v387_v26  ;;  %v579_v36 = vpack.c.bf16 %v396_v29, %v395_v27 }
  0xfa   :  { %v632_v37 = vpop.f32.mrf.mxu0  ;;  %v656_v38 = vpop.f32.mrf.mxu1  ;;  %v373_v39 = vadd.f32 %v849_v43, %v350_v24  ;;  %v381_v40 = vadd.f32 %v849_v43, %v358_v25 }
  0xfb   :  { %v351_v41 = vmul.f32 %v631_v32, %v842_v35  ;;  %v359_v42 = vmul.f32 %v655_v33, %v842_v35  ;;  %591 = vst [vmem:[%s909_s4 + $0x8] sm:$0xff] %v559_v34   ;;  %595 = vst [vmem:[%s909_s4 + $0x28] sm:$0xff] %v579_v36  }
  0xfc   :  { %v633_v44 = vpop.f32.mrf.mxu0  ;;  %v657_v45 = vpop.f32.mrf.mxu1  ;;  %v389_v52 = vmax.f32 %v373_v39, 0.0  ;;  %v397_v53 = vmax.f32 %v381_v40, 0.0 }
  0xfd   :  { %v374_v46 = vadd.f32 %v849_v43, %v351_v41  ;;  %v382_v47 = vadd.f32 %v849_v43, %v359_v42  ;;  %v634_v48 = vadd.f32 %v633_v44, %v632_v37  ;;  %v658_v49 = vadd.f32 %v657_v45, %v656_v38 }
  0xfe   :  { %v635_v50 = vpop.f32.mrf.mxu0  ;;  %v659_v51 = vpop.f32.mrf.mxu1 }
  0xff   :  { %v390_v54 = vmax.f32 %v374_v46, 0.0  ;;  %v398_v55 = vmax.f32 %v382_v47, 0.0  ;;  %v352_v56 = vmul.f32 %v634_v48, %v842_v35  ;;  %v360_v57 = vmul.f32 %v658_v49, %v842_v35 }
 0x100   :  { %v636_v58 = vpop.f32.mrf.mxu0  ;;  %v660_v59 = vpop.f32.mrf.mxu1 }
 0x101   :  { %v564_v60 = vpack.c.bf16 %v390_v54, %v389_v52  ;;  %v584_v61 = vpack.c.bf16 %v398_v55, %v397_v53  ;;  %v637_v62 = vadd.f32 %v636_v58, %v635_v50  ;;  %v661_v63 = vadd.f32 %v660_v59, %v659_v51 }
 0x102   :  { %v375_v0 = vadd.f32 %v849_v43, %v352_v56  ;;  %v383_v1 = vadd.f32 %v849_v43, %v360_v57 }
 0x103   :  { %592 = vst [vmem:[%s909_s4 + $0x10] sm:$0xff] %v564_v60   ;;  %596 = vst [vmem:[%s909_s4 + $0x30] sm:$0xff] %v584_v61   ;;  %v353_v2 = vmul.f32 %v637_v62, %v842_v35  ;;  %v361_v3 = vmul.f32 %v661_v63, %v842_v35 }
 0x104   :  { %v391_v6 = vmax.f32 %v375_v0, 0.0  ;;  %v399_v7 = vmax.f32 %v383_v1, 0.0 }
 0x105   :  { %v376_v4 = vadd.f32 %v849_v43, %v353_v2  ;;  %v384_v5 = vadd.f32 %v849_v43, %v361_v3 }
 0x107   :  { %v392_v8 = vmax.f32 %v376_v4, 0.0  ;;  %v400_v9 = vmax.f32 %v384_v5, 0.0 }
 0x109   :  { %v569_v10 = vpack.c.bf16 %v392_v8, %v391_v6  ;;  %v589_v11 = vpack.c.bf16 %v400_v9, %v399_v7 }
 0x10b   :  { %593 = vst [vmem:[%s909_s4 + $0x18] sm:$0xff] %v569_v10   ;;  %597 = vst [vmem:[%s909_s4 + $0x38] sm:$0xff] %v589_v11  }

// kernel: _lambda_.7
= control target key start
LH: loop header
LB: loop body
LE: loop exit
PB: predicated region body
PF: predicated region fallthrough
CT: control target
= control target key end

     0   :  { %s354_s0 = inlined_call_operand.vmem [shape: bf16[9,32,128], index: 0, kind: input, shape index: {}]   ;;  %s355_s1 = inlined_call_operand.vmem [shape: bf16[32,128], index: 1, kind: output, shape index: {}]  }
   0x1   :  { %v185_v0 = vld [vmem:[%s354_s0] sm:$0xff]   ;;  %v267_v1 = vld [vmem:[%s354_s0 + $0x10] sm:$0xff]   ;;  %v266_v17 = vld [vmem:[%s354_s0 + $0x8] sm:$0xff]  }
   0x2   :  { %v269_v2 = vld [vmem:[%s354_s0 + $0x20] sm:$0xff]   ;;  %v186_v3 = vunpack.c.l.bf16 %v185_v0  ;;  %v187_v4 = vunpack.c.h.bf16 %v185_v0  ;;  %v194_v5 = vunpack.c.l.bf16 %v267_v1  ;;  %v195_v6 = vunpack.c.h.bf16 %v267_v1  ;;  %v271_v7 = vld [vmem:[%s354_s0 + $0x30] sm:$0xff]   ;;  %v268_v20 = vld [vmem:[%s354_s0 + $0x18] sm:$0xff]  }
   0x3   :  { %v273_v8 = vld [vmem:[%s354_s0 + $0x40] sm:$0xff]   ;;  %v202_v9 = vunpack.c.l.bf16 %v269_v2  ;;  %v203_v10 = vunpack.c.h.bf16 %v269_v2  ;;  %v275_v11 = vld [vmem:[%s354_s0 + $0x50] sm:$0xff]   ;;  %v210_v14 = vunpack.c.l.bf16 %v271_v7  ;;  %v211_v15 = vunpack.c.h.bf16 %v271_v7  ;;  %v270_v25 = vld [vmem:[%s354_s0 + $0x28] sm:$0xff]  }
   0x4   :  { %v25_v12 = vmax.f32 %v186_v3, %v194_v5  ;;  %v26_v13 = vmax.f32 %v187_v4, %v195_v6  ;;  %v277_v16 = vld [vmem:[%s354_s0 + $0x60] sm:$0xff]   ;;  %v218_v18 = vunpack.c.l.bf16 %v273_v8  ;;  %v219_v19 = vunpack.c.h.bf16 %v273_v8  ;;  %v272_v26 = vld [vmem:[%s354_s0 + $0x38] sm:$0xff]   ;;  %v279_v33 = vld [vmem:[%s354_s0 + $0x70] sm:$0xff]  }
   0x5   :  { %v226_v23 = vunpack.c.l.bf16 %v275_v11  ;;  %v227_v24 = vunpack.c.h.bf16 %v275_v11  ;;  %v234_v27 = vunpack.c.l.bf16 %v277_v16  ;;  %v235_v28 = vunpack.c.h.bf16 %v277_v16  ;;  %v274_v36 = vld [vmem:[%s354_s0 + $0x48] sm:$0xff]   ;;  %v281_v43 = vld [vmem:[%s354_s0 + $0x80] sm:$0xff]   ;;  %v276_v46 = vld [vmem:[%s354_s0 + $0x58] sm:$0xff]  }
   0x6   :  { %v38_v21 = vmax.f32 %v25_v12, %v202_v9  ;;  %v39_v22 = vmax.f32 %v26_v13, %v203_v10  ;;  %v190_v29 = vunpack.c.l.bf16 %v266_v17  ;;  %v191_v30 = vunpack.c.h.bf16 %v266_v17  ;;  %v278_v55 = vld [vmem:[%s354_s0 + $0x68] sm:$0xff]   ;;  %v280_v0 = vld [vmem:[%s354_s0 + $0x78] sm:$0xff]  }
   0x7   :  { %v198_v34 = vunpack.c.l.bf16 %v268_v20  ;;  %v199_v35 = vunpack.c.h.bf16 %v268_v20  ;;  %v206_v37 = vunpack.c.l.bf16 %v270_v25  ;;  %v207_v38 = vunpack.c.h.bf16 %v270_v25  ;;  %v282_v7 = vld [vmem:[%s354_s0 + $0x88] sm:$0xff]  }
   0x8   :  { %v51_v31 = vmax.f32 %v38_v21, %v210_v14  ;;  %v52_v32 = vmax.f32 %v39_v22, %v211_v15  ;;  %v214_v39 = vunpack.c.l.bf16 %v272_v26  ;;  %v215_v40 = vunpack.c.h.bf16 %v272_v26 }
   0x9   :  { %v27_v44 = vmax.f32 %v190_v29, %v198_v34  ;;  %v28_v45 = vmax.f32 %v191_v30, %v199_v35  ;;  %v242_v47 = vunpack.c.l.bf16 %v279_v33  ;;  %v243_v48 = vunpack.c.h.bf16 %v279_v33 }
   0xa   :  { %v64_v41 = vmax.f32 %v51_v31, %v218_v18  ;;  %v65_v42 = vmax.f32 %v52_v32, %v219_v19  ;;  %v222_v49 = vunpack.c.l.bf16 %v274_v36  ;;  %v223_v50 = vunpack.c.h.bf16 %v274_v36 }
   0xb   :  { %v40_v53 = vmax.f32 %v27_v44, %v206_v37  ;;  %v41_v54 = vmax.f32 %v28_v45, %v207_v38  ;;  %v250_v56 = vunpack.c.l.bf16 %v281_v43  ;;  %v251_v57 = vunpack.c.h.bf16 %v281_v43 }
   0xc   :  { %v77_v51 = vmax.f32 %v64_v41, %v226_v23  ;;  %v78_v52 = vmax.f32 %v65_v42, %v227_v24  ;;  %v230_v58 = vunpack.c.l.bf16 %v276_v46  ;;  %v231_v59 = vunpack.c.h.bf16 %v276_v46 }
   0xd   :  { %v53_v62 = vmax.f32 %v40_v53, %v214_v39  ;;  %v54_v63 = vmax.f32 %v41_v54, %v215_v40  ;;  %v238_v1 = vunpack.c.l.bf16 %v278_v55  ;;  %v239_v2 = vunpack.c.h.bf16 %v278_v55 }
   0xe   :  { %v90_v60 = vmax.f32 %v77_v51, %v234_v27  ;;  %v91_v61 = vmax.f32 %v78_v52, %v235_v28  ;;  %v246_v8 = vunpack.c.l.bf16 %v280_v0  ;;  %v247_v9 = vunpack.c.h.bf16 %v280_v0 }
   0xf   :  { %v66_v5 = vmax.f32 %v53_v62, %v222_v49  ;;  %v67_v6 = vmax.f32 %v54_v63, %v223_v50  ;;  %v254_v14 = vunpack.c.l.bf16 %v282_v7  ;;  %v255_v18 = vunpack.c.h.bf16 %v282_v7 }
  0x10   :  { %v103_v3 = vmax.f32 %v90_v60, %v242_v47  ;;  %v104_v4 = vmax.f32 %v91_v61, %v243_v48 }
  0x11   :  { %v79_v12 = vmax.f32 %v66_v5, %v230_v58  ;;  %v80_v13 = vmax.f32 %v67_v6, %v231_v59 }
  0x12   :  { %v116_v10 = vmax.f32 %v103_v3, %v250_v56  ;;  %v117_v11 = vmax.f32 %v104_v4, %v251_v57 }
  0x13   :  { %v92_v16 = vmax.f32 %v79_v12, %v238_v1  ;;  %v93_v17 = vmax.f32 %v80_v13, %v239_v2 }
  0x14   :  { %v259_v15 = vpack.c.bf16 %v117_v11, %v116_v10 }
  0x15   :  { %v105_v19 = vmax.f32 %v92_v16, %v246_v8  ;;  %v106_v20 = vmax.f32 %v93_v17, %v247_v9 }
  0x16   :  { %260 = vst [vmem:[%s355_s1] sm:$0xff] %v259_v15  }
  0x17   :  { %v118_v21 = vmax.f32 %v105_v19, %v254_v14  ;;  %v119_v22 = vmax.f32 %v106_v20, %v255_v18 }
  0x19   :  { %v264_v23 = vpack.c.bf16 %v119_v22, %v118_v21 }
  0x1b   :  { %283 = vst [vmem:[%s355_s1 + $0x8] sm:$0xff] %v264_v23  }

// kernel: _lambda_.8
= control target key start
LH: loop header
LB: loop body
LE: loop exit
PB: predicated region body
PF: predicated region fallthrough
CT: control target
= control target key end

     0   :  { %s335_s1 = inlined_call_operand.vmem [shape: bf16[128,128], index: 1, kind: input, shape index: {}]   ;;  %s336_s0 = inlined_call_operand.vmem [shape: bf16[32,128], index: 0, kind: input, shape index: {}]   ;;  %s337_s2 = inlined_call_operand.vmem [shape: f32[1,128], index: 2, kind: input, shape index: {}]   ;;  %s338_s3 = inlined_call_operand.vmem [shape: f32[1,128], index: 3, kind: input, shape index: {}]   ;;  %s339_s4 = inlined_call_operand.vmem [shape: bf16[32,128], index: 4, kind: output, shape index: {}]  }
   0x1   :  { %v258_v0 = vld [vmem:[%s335_s1 + $0x38] sm:$0xff]   ;;  %v259_v1 = vld [vmem:[%s335_s1 + $0x30] sm:$0xff]   ;;  %v260_v2 = vld [vmem:[%s335_s1 + $0x28] sm:$0xff]  }
   0x2   :  { %238 = vmatprep.subr.bf16.mxu0 %v258_v0  ;;  %v261_v3 = vld [vmem:[%s335_s1 + $0x20] sm:$0xff]   ;;  %v262_v5 = vld [vmem:[%s335_s1 + $0x18] sm:$0xff]   ;;  %v263_v6 = vld [vmem:[%s335_s1 + $0x10] sm:$0xff]  }
   0x3   :  { %239 = vmatpush3.bf16.msra.mxu0 %v258_v0  ;;  %v266_v4 = vld [vmem:[%s336_s0] sm:$0xff]   ;;  %v264_v7 = vld [vmem:[%s335_s1 + $0x8] sm:$0xff]  }
   0x4   :  { %240 = vmatprep.subr.bf16.mxu0 %v259_v1  ;;  %254 = vmatprep.mubr.bf16.mxu0 %v266_v4  ;;  %v265_v8 = vld [vmem:[%s335_s1] sm:$0xff]   ;;  %v267_v9 = vld [vmem:[%s336_s0 + $0x8] sm:$0xff]  }
   0x5   :  { %v207_v10 = vld [vmem:[%s337_s2] ss:$0 sm:$0xff] }
   0x6   :  { %v208_v13 = vld [vmem:[%s338_s3] ss:$0 sm:$0xff] }
   0x7   :  { %241 = vmatpush3.bf16.msra.mxu0 %v259_v1 }
   0x8   :  { %242 = vmatprep.subr.bf16.mxu0 %v260_v2 }
   0xb   :  { %243 = vmatpush3.bf16.msra.mxu0 %v260_v2 }
   0xc   :  { %244 = vmatprep.subr.bf16.mxu0 %v261_v3 }
   0xf   :  { %245 = vmatpush3.bf16.msra.mxu0 %v261_v3 }
  0x10   :  { %246 = vmatprep.subr.bf16.mxu0 %v262_v5 }
  0x13   :  { %247 = vmatpush3.bf16.msra.mxu0 %v262_v5 }
  0x14   :  { %248 = vmatprep.subr.bf16.mxu0 %v263_v6 }
  0x17   :  { %249 = vmatpush3.bf16.msra.mxu0 %v263_v6 }
  0x18   :  { %250 = vmatprep.subr.bf16.mxu0 %v264_v7 }
  0x1b   :  { %251 = vmatpush3.bf16.msra.mxu0 %v264_v7 }
  0x1c   :  { %252 = vmatprep.subr.bf16.mxu0 %v265_v8 }
  0x1f   :  { %253 = vmatpush3.bf16.msra.mxu0 %v265_v8 }
  0x22   :  { %255 = vmatmul.mubr.bf16.vlgmr.msra.gmra.mxu0 %v267_v9 }
  0xe2   :  { %v256_v11 = vpop.f32.mrf.mxu0 }
  0xe3   :  { %v156_v12 = vmul.f32 %v256_v11, %v207_v10 }
  0xe4   :  { %v132_v14 = vpop.f32.mrf.mxu0 }
  0xe5   :  { %v154_v15 = vmul.f32 %v207_v10, %v132_v14  ;;  %v167_v17 = vadd.f32 %v208_v13, %v156_v12 }
  0xe6   :  { %v257_v16 = vpop.f32.mrf.mxu0 }
  0xe7   :  { %v157_v18 = vmul.f32 %v257_v16, %v207_v10  ;;  %v165_v20 = vadd.f32 %v208_v13, %v154_v15  ;;  %v171_v23 = vmax.f32 %v167_v17, 0.0 }
  0xe8   :  { %v135_v19 = vpop.f32.mrf.mxu0 }
  0xe9   :  { %v168_v21 = vadd.f32 %v208_v13, %v157_v18  ;;  %v155_v22 = vmul.f32 %v207_v10, %v135_v19  ;;  %v169_v26 = vmax.f32 %v165_v20, 0.0 }
  0xeb   :  { %v172_v24 = vmax.f32 %v168_v21, 0.0  ;;  %v166_v25 = vadd.f32 %v208_v13, %v155_v22 }
  0xed   :  { %v225_v27 = vpack.c.bf16 %v172_v24, %v171_v23  ;;  %v170_v28 = vmax.f32 %v166_v25, 0.0 }
  0xef   :  { %227 = vst [vmem:[%s339_s4 + $0x8] sm:$0xff] %v225_v27   ;;  %v220_v29 = vpack.c.bf16 %v170_v28, %v169_v26 }
  0xf1   :  { %221 = vst [vmem:[%s339_s4] sm:$0xff] %v220_v29  }

// kernel: _lambda_.11
= control target key start
LH: loop header
LB: loop body
LE: loop exit
PB: predicated region body
PF: predicated region fallthrough
CT: control target
= control target key end

     0   :  { %s1908_s1 = inlined_call_operand.vmem [shape: bf16[1152,128], index: 1, kind: input, shape index: {}]   ;;  %s1909_s0 = inlined_call_operand.vmem [shape: bf16[32,1152], index: 0, kind: input, shape index: {}]   ;;  %s1910_s4 = inlined_call_operand.vmem [shape: bf16[128,128], index: 4, kind: input, shape index: {}]   ;;  %s1911_s2 = inlined_call_operand.vmem [shape: f32[1,128], index: 2, kind: input, shape index: {}]   ;;  %s1912_s3 = inlined_call_operand.vmem [shape: f32[1,128], index: 3, kind: input, shape index: {}]   ;;  %s1913_s5 = inlined_call_operand.vmem [shape: f32[1,128], index: 5, kind: input, shape index: {}]   ;;  %s1914_s7 = inlined_call_operand.vmem [shape: bf16[32,128], index: 7, kind: input, shape index: {}]   ;;  %s1915_s6 = inlined_call_operand.vmem [shape: f32[1,128], index: 6, kind: input, shape index: {}]   ;;  %s1916_s8 = inlined_call_operand.vmem [shape: f32[32,128], index: 8, kind: output, shape index: {}]  }
   0x1   :  { %v1433_v0 = vld [vmem:[%s1908_s1 + $0x78] sm:$0xff]   ;;  %v1437_v4 = vld [vmem:[%s1908_s1 + $0x70] sm:$0xff]   ;;  %v1441_v8 = vld [vmem:[%s1908_s1 + $0x68] sm:$0xff]  }
   0x2   :  { %v1434_v1 = vld [vmem:[%s1908_s1 + $0xf8] sm:$0xff]   ;;  %1261 = vmatprep.subr.bf16.mxu0 %v1433_v0  ;;  %v1438_v5 = vld [vmem:[%s1908_s1 + $0xf0] sm:$0xff]   ;;  %v1442_v9 = vld [vmem:[%s1908_s1 + $0xe8] sm:$0xff]  }
   0x3   :  { %v1435_v2 = vld [vmem:[%s1908_s1 + $0x38] sm:$0xff]   ;;  %1289 = vmatprep.subr.bf16.mxu1 %v1434_v1  ;;  %v1439_v6 = vld [vmem:[%s1908_s1 + $0x30] sm:$0xff]   ;;  %v1443_v10 = vld [vmem:[%s1908_s1 + $0x28] sm:$0xff]  }
   0x4   :  { %v1436_v3 = vld [vmem:[%s1908_s1 + $0xb8] sm:$0xff]   ;;  %1262 = vmatpush3.bf16.msra.mxu0 %v1435_v2  ;;  %v1440_v7 = vld [vmem:[%s1908_s1 + $0xb0] sm:$0xff]   ;;  %v1444_v11 = vld [vmem:[%s1908_s1 + $0xa8] sm:$0xff]  }
   0x5   :  { %1290 = vmatpush3.bf16.msra.mxu1 %v1436_v3  ;;  %1263 = vmatprep.subr.bf16.mxu0 %v1437_v4  ;;  %v1445_v12 = vld [vmem:[%s1908_s1 + $0x60] sm:$0xff]   ;;  %v1449_v16 = vld [vmem:[%s1908_s1 + $0x58] sm:$0xff]   ;;  %v1453_v20 = vld [vmem:[%s1908_s1 + $0x50] sm:$0xff]  }
   0x6   :  { %1291 = vmatprep.subr.bf16.mxu1 %v1438_v5  ;;  %v1446_v13 = vld [vmem:[%s1908_s1 + $0xe0] sm:$0xff]   ;;  %v1450_v17 = vld [vmem:[%s1908_s1 + $0xd8] sm:$0xff]   ;;  %v1454_v21 = vld [vmem:[%s1908_s1 + $0xd0] sm:$0xff]  }
   0x7   :  { %v1447_v14 = vld [vmem:[%s1908_s1 + $0x20] sm:$0xff]   ;;  %v1451_v18 = vld [vmem:[%s1908_s1 + $0x18] sm:$0xff]   ;;  %v1455_v22 = vld [vmem:[%s1908_s1 + $0x10] sm:$0xff]  }
   0x8   :  { %1264 = vmatpush3.bf16.msra.mxu0 %v1439_v6  ;;  %v1448_v15 = vld [vmem:[%s1908_s1 + $0xa0] sm:$0xff]   ;;  %v1452_v19 = vld [vmem:[%s1908_s1 + $0x98] sm:$0xff]   ;;  %v1456_v23 = vld [vmem:[%s1908_s1 + $0x90] sm:$0xff]  }
   0x9   :  { %1292 = vmatpush3.bf16.msra.mxu1 %v1440_v7  ;;  %1265 = vmatprep.subr.bf16.mxu0 %v1441_v8  ;;  %v1457_v24 = vld [vmem:[%s1908_s1 + $0x48] sm:$0xff]   ;;  %v1461_v28 = vld [vmem:[%s1908_s1 + $0x40] sm:$0xff]   ;;  %v1471_v36 = vld [vmem:[%s1908_s1 + $0x178] sm:$0xff]  }
   0xa   :  { %1293 = vmatprep.subr.bf16.mxu1 %v1442_v9  ;;  %v1458_v25 = vld [vmem:[%s1908_s1 + $0xc8] sm:$0xff]   ;;  %v1462_v29 = vld [vmem:[%s1908_s1 + $0xc0] sm:$0xff]   ;;  %v1472_v37 = vld [vmem:[%s1908_s1 + $0x138] sm:$0xff]  }
   0xb   :  { %v1459_v26 = vld [vmem:[%s1908_s1 + $0x8] sm:$0xff]   ;;  %v1463_v30 = vld [vmem:[%s1908_s1] sm:$0xff]   ;;  %v1473_v38 = vld [vmem:[%s1908_s1 + $0x1f8] sm:$0xff]  }
   0xc   :  { %1266 = vmatpush3.bf16.msra.mxu0 %v1443_v10  ;;  %v1460_v27 = vld [vmem:[%s1908_s1 + $0x88] sm:$0xff]   ;;  %v1464_v31 = vld [vmem:[%s1908_s1 + $0x80] sm:$0xff]   ;;  %v1474_v39 = vld [vmem:[%s1908_s1 + $0x1b8] sm:$0xff]  }
   0xd   :  { %1294 = vmatpush3.bf16.msra.mxu1 %v1444_v11  ;;  %1267 = vmatprep.subr.bf16.mxu0 %v1445_v12  ;;  %v1465_v32 = vld [vmem:[%s1909_s0] ss:$36 sps:$4 sm:$0xff]   ;;  %v1468_v34 = vld [vmem:[%s1909_s0 + $0x8] ss:$36 sps:$4 sm:$0xff]   ;;  %v1475_v40 = vld [vmem:[%s1908_s1 + $0x170] sm:$0xff]  }
   0xe   :  { %1295 = vmatprep.subr.bf16.mxu1 %v1446_v13  ;;  %v1467_v33 = vld [vmem:[%s1909_s0 + $0x4] ss:$36 sps:$4 sm:$0xff]   ;;  %v1470_v35 = vld [vmem:[%s1909_s0 + $0xc] ss:$36 sps:$4 sm:$0xff]   ;;  %v1487_v52 = vld [vmem:[%s1908_s1 + $0x158] sm:$0xff]  }
   0xf   :  { %750 = vmatprep.mubr.bf16.mxu0 %v1467_v33  ;;  %799 = vmatprep.mubr.bf16.mxu1 %v1470_v35  ;;  %v1476_v41 = vld [vmem:[%s1908_s1 + $0x130] sm:$0xff]   ;;  %v1479_v44 = vld [vmem:[%s1908_s1 + $0x168] sm:$0xff]   ;;  %v1483_v48 = vld [vmem:[%s1908_s1 + $0x160] sm:$0xff]  }
  0x10   :  { %1268 = vmatpush3.bf16.msra.mxu0 %v1447_v14  ;;  %v1477_v42 = vld [vmem:[%s1908_s1 + $0x1f0] sm:$0xff]   ;;  %v1480_v45 = vld [vmem:[%s1908_s1 + $0x128] sm:$0xff]   ;;  %v1484_v49 = vld [vmem:[%s1908_s1 + $0x120] sm:$0xff]  }
  0x11   :  { %1296 = vmatpush3.bf16.msra.mxu1 %v1448_v15  ;;  %1269 = vmatprep.subr.bf16.mxu0 %v1449_v16  ;;  %v1478_v43 = vld [vmem:[%s1908_s1 + $0x1b0] sm:$0xff]   ;;  %v1481_v46 = vld [vmem:[%s1908_s1 + $0x1e8] sm:$0xff]   ;;  %v1485_v50 = vld [vmem:[%s1908_s1 + $0x1e0] sm:$0xff]  }
  0x12   :  { %1297 = vmatprep.subr.bf16.mxu1 %v1450_v17  ;;  %v1482_v47 = vld [vmem:[%s1908_s1 + $0x1a8] sm:$0xff]   ;;  %v1486_v51 = vld [vmem:[%s1908_s1 + $0x1a0] sm:$0xff]   ;;  %v1488_v53 = vld [vmem:[%s1908_s1 + $0x118] sm:$0xff]  }
  0x13   :  { %v1489_v54 = vld [vmem:[%s1909_s0 + $0x4c] ss:$36 sps:$4 sm:$0xff]   ;;  %v1491_v55 = vld [vmem:[%s1909_s0 + $0x54] ss:$36 sps:$4 sm:$0xff]   ;;  %v1505_v4 = vld [vmem:[%s1908_s1 + $0x140] sm:$0xff]  }
  0x14   :  { %1270 = vmatpush3.bf16.msra.mxu0 %v1451_v18  ;;  %v1493_v56 = vld [vmem:[%s1908_s1 + $0x1d8] sm:$0xff]   ;;  %v1494_v57 = vld [vmem:[%s1909_s0 + $0x48] ss:$36 sps:$4 sm:$0xff]   ;;  %v1495_v58 = vld [vmem:[%s1909_s0 + $0x50] ss:$36 sps:$4 sm:$0xff]  }
  0x15   :  { %1298 = vmatpush3.bf16.msra.mxu1 %v1452_v19  ;;  %1271 = vmatprep.subr.bf16.mxu0 %v1453_v20  ;;  %v1496_v59 = vld [vmem:[%s1908_s1 + $0x198] sm:$0xff]   ;;  %v1497_v60 = vld [vmem:[%s1908_s1 + $0x150] sm:$0xff]   ;;  %v1501_v0 = vld [vmem:[%s1908_s1 + $0x148] sm:$0xff]  }
  0x16   :  { %1299 = vmatprep.subr.bf16.mxu1 %v1454_v21  ;;  %v1498_v61 = vld [vmem:[%s1908_s1 + $0x110] sm:$0xff]   ;;  %v1502_v1 = vld [vmem:[%s1908_s1 + $0x108] sm:$0xff]   ;;  %v1506_v5 = vld [vmem:[%s1908_s1 + $0x100] sm:$0xff]  }
  0x17   :  { %v1499_v62 = vld [vmem:[%s1908_s1 + $0x1d0] sm:$0xff]   ;;  %v1503_v2 = vld [vmem:[%s1908_s1 + $0x1c8] sm:$0xff]   ;;  %v1507_v6 = vld [vmem:[%s1908_s1 + $0x1c0] sm:$0xff]  }
  0x18   :  { %1272 = vmatpush3.bf16.msra.mxu0 %v1455_v22  ;;  %v1500_v63 = vld [vmem:[%s1908_s1 + $0x190] sm:$0xff]   ;;  %v1504_v3 = vld [vmem:[%s1908_s1 + $0x188] sm:$0xff]   ;;  %v1511_v9 = vld [vmem:[%s1908_s1 + $0x180] sm:$0xff]  }
  0x19   :  { %1300 = vmatpush3.bf16.msra.mxu1 %v1456_v23  ;;  %1273 = vmatprep.subr.bf16.mxu0 %v1457_v24  ;;  %v1508_v7 = vld [vmem:[%s1909_s0 + $0x10] ss:$36 sps:$4 sm:$0xff]   ;;  %v1512_v10 = vld [vmem:[%s1908_s1 + $0x238] sm:$0xff]   ;;  %v1520_v16 = vld [vmem:[%s1908_s1 + $0x228] sm:$0xff]  }
  0x1a   :  { %1301 = vmatprep.subr.bf16.mxu1 %v1458_v25  ;;  %v1510_v8 = vld [vmem:[%s1909_s0 + $0x14] ss:$36 sps:$4 sm:$0xff]   ;;  %v1515_v12 = vld [vmem:[%s1909_s0 + $0x1c] ss:$36 sps:$4 sm:$0xff]   ;;  %v1521_v17 = vld [vmem:[%s1909_s0 + $0x64] ss:$36 sps:$4 sm:$0xff]  }
  0x1b   :  { %v1513_v11 = vld [vmem:[%s1909_s0 + $0x18] ss:$36 sps:$4 sm:$0xff]   ;;  %v1516_v13 = vld [vmem:[%s1908_s1 + $0x230] sm:$0xff]   ;;  %v1523_v18 = vld [vmem:[%s1909_s0 + $0x60] ss:$36 sps:$4 sm:$0xff]  }
  0x1c   :  { %1274 = vmatpush3.bf16.msra.mxu0 %v1459_v26  ;;  %v1517_v14 = vld [vmem:[%s1909_s0 + $0x5c] ss:$36 sps:$4 sm:$0xff]   ;;  %v1526_v22 = vld [vmem:[%s1908_s1 + $0x210] sm:$0xff]   ;;  %v1527_v23 = vld [vmem:[%s1908_s1 + $0x208] sm:$0xff]  }
  0x1d   :  { %1302 = vmatpush3.bf16.msra.mxu1 %v1460_v27  ;;  %1275 = vmatprep.subr.bf16.mxu0 %v1461_v28  ;;  %v1519_v15 = vld [vmem:[%s1909_s0 + $0x58] ss:$36 sps:$4 sm:$0xff]   ;;  %v1524_v19 = vld [vmem:[%s1908_s1 + $0x220] sm:$0xff]   ;;  %v1530_v25 = vld [vmem:[%s1909_s0 + $0x68] ss:$36 sps:$4 sm:$0xff]  }
  0x1e   :  { %1303 = vmatprep.subr.bf16.mxu1 %v1462_v29  ;;  %v1525_v20 = vld [vmem:[%s1908_s1 + $0x218] sm:$0xff]   ;;  %v1529_v21 = vld [vmem:[%s1909_s0 + $0x20] ss:$36 sps:$4 sm:$0xff]   ;;  %v1532_v27 = vld [vmem:[%s1910_s4 + $0x30] sm:$0xff]  }
  0x1f   :  { %v1528_v24 = vld [vmem:[%s1908_s1 + $0x200] sm:$0xff]   ;;  %v1531_v26 = vld [vmem:[%s1910_s4 + $0x38] sm:$0xff]   ;;  %v1533_v28 = vld [vmem:[%s1910_s4 + $0x28] sm:$0xff]  }
  0x20   :  { %1276 = vmatpush3.bf16.msra.mxu0 %v1463_v30  ;;  %v1534_v29 = vld [vmem:[%s1910_s4 + $0x20] sm:$0xff]   ;;  %v1535_v30 = vld [vmem:[%s1910_s4 + $0x18] sm:$0xff]  }
  0x21   :  { %1304 = vmatpush3.bf16.msra.mxu1 %v1464_v31  ;;  %1317 = vmatprep.subr.bf16.mxu0 %v1471_v36  ;;  %v1536_v31 = vld [vmem:[%s1910_s4 + $0x10] sm:$0xff]   ;;  %v1538_v33 = vld [vmem:[%s1910_s4] sm:$0xff]  }
  0x22   :  { %1345 = vmatprep.subr.bf16.mxu1 %v1473_v38 }
  0x23   :  { %751 = vmatmul.mubr.bf16.vlgmr.msra.gmra.mxu0 %v1465_v32  ;;  %v1537_v32 = vld [vmem:[%s1910_s4 + $0x8] sm:$0xff]  }
  0x24   :  { %800 = vmatmul.mubr.bf16.vlgmr.msra.gmra.mxu1 %v1468_v34  ;;  %1318 = vmatpush3.bf16.msra.mxu0 %v1472_v37 }
  0x25   :  { %1346 = vmatpush3.bf16.msra.mxu1 %v1474_v39  ;;  %1319 = vmatprep.subr.bf16.mxu0 %v1475_v40 }
  0x26   :  { %1347 = vmatprep.subr.bf16.mxu1 %v1477_v42  ;;  %758 = vmatprep.mubr.bf16.mxu0 %v1489_v54 }
  0x27   :  { %807 = vmatprep.mubr.bf16.mxu1 %v1491_v55 }
  0x28   :  { %1320 = vmatpush3.bf16.msra.mxu0 %v1476_v41 }
  0x29   :  { %1348 = vmatpush3.bf16.msra.mxu1 %v1478_v43  ;;  %1321 = vmatprep.subr.bf16.mxu0 %v1479_v44 }
  0x2a   :  { %1349 = vmatprep.subr.bf16.mxu1 %v1481_v46 }
  0x2b   :  { %759 = vmatmul.mubr.bf16.gmra.mxu0 %v1494_v57 }
  0x2c   :  { %1322 = vmatpush3.bf16.msra.mxu0 %v1480_v45  ;;  %808 = vmatmul.mubr.bf16.gmra.mxu1 %v1495_v58 }
  0x2d   :  { %1350 = vmatpush3.bf16.msra.mxu1 %v1482_v47  ;;  %1323 = vmatprep.subr.bf16.mxu0 %v1483_v48 }
  0x2e   :  { %1351 = vmatprep.subr.bf16.mxu1 %v1485_v50  ;;  %848 = vmatprep.mubr.bf16.mxu0 %v1510_v8 }
  0x2f   :  { %897 = vmatprep.mubr.bf16.mxu1 %v1515_v12 }
  0x30   :  { %1324 = vmatpush3.bf16.msra.mxu0 %v1484_v49 }
  0x31   :  { %1352 = vmatpush3.bf16.msra.mxu1 %v1486_v51  ;;  %1325 = vmatprep.subr.bf16.mxu0 %v1487_v52 }
  0x32   :  { %1353 = vmatprep.subr.bf16.mxu1 %v1493_v56 }
  0x34   :  { %1326 = vmatpush3.bf16.msra.mxu0 %v1488_v53 }
  0x35   :  { %1354 = vmatpush3.bf16.msra.mxu1 %v1496_v59  ;;  %1327 = vmatprep.subr.bf16.mxu0 %v1497_v60 }
  0x36   :  { %1355 = vmatprep.subr.bf16.mxu1 %v1499_v62 }
  0x38   :  { %1328 = vmatpush3.bf16.msra.mxu0 %v1498_v61 }
  0x39   :  { %1356 = vmatpush3.bf16.msra.mxu1 %v1500_v63  ;;  %1329 = vmatprep.subr.bf16.mxu0 %v1501_v0 }
  0x3a   :  { %1357 = vmatprep.subr.bf16.mxu1 %v1503_v2 }
  0x3c   :  { %1330 = vmatpush3.bf16.msra.mxu0 %v1502_v1 }
  0x3d   :  { %1358 = vmatpush3.bf16.msra.mxu1 %v1504_v3  ;;  %1331 = vmatprep.subr.bf16.mxu0 %v1505_v4 }
  0x3e   :  { %1359 = vmatprep.subr.bf16.mxu1 %v1507_v6 }
  0x40   :  { %1332 = vmatpush3.bf16.msra.mxu0 %v1506_v5 }
  0x41   :  { %1360 = vmatpush3.bf16.msra.mxu1 %v1511_v9  ;;  %1393 = vmatprep.subr.bf16.mxu0 %v1512_v10 }
  0x42   :  { %1413 = vmatprep.subr.bf16.mxu1 %v1531_v26 }
  0x43   :  { %849 = vmatmul.mubr.bf16.vlgmr.msra.gmra.mxu0 %v1508_v7 }
  0x44   :  { %1394 = vmatpush3.bf16.msra.mxu0 %v1512_v10  ;;  %898 = vmatmul.mubr.bf16.vlgmr.msra.gmra.mxu1 %v1513_v11 }
  0x45   :  { %1395 = vmatprep.subr.bf16.mxu0 %v1516_v13  ;;  %856 = vmatprep.mubr.bf16.mxu0 %v1517_v14 }
  0x46   :  { %905 = vmatprep.mubr.bf16.mxu1 %v1521_v17  ;;  %1414 = vmatpush3.bf16.msra.mxu1 %v1531_v26 }
  0x47   :  { %1415 = vmatprep.subr.bf16.mxu1 %v1532_v27 }
  0x48   :  { %1396 = vmatpush3.bf16.msra.mxu0 %v1516_v13 }
  0x49   :  { %1397 = vmatprep.subr.bf16.mxu0 %v1520_v16 }
  0x4a   :  { %1416 = vmatpush3.bf16.msra.mxu1 %v1532_v27 }
  0x4b   :  { %857 = vmatmul.mubr.bf16.gmra.mxu0 %v1519_v15  ;;  %1417 = vmatprep.subr.bf16.mxu1 %v1533_v28 }
  0x4c   :  { %1398 = vmatpush3.bf16.msra.mxu0 %v1520_v16  ;;  %906 = vmatmul.mubr.bf16.gmra.mxu1 %v1523_v18 }
  0x4d   :  { %1399 = vmatprep.subr.bf16.mxu0 %v1524_v19  ;;  %1409 = vmatprep.mubr.bf16.mxu0 %v1529_v21 }
  0x4e   :  { %1418 = vmatpush3.bf16.msra.mxu1 %v1533_v28 }
  0x4f   :  { %1419 = vmatprep.subr.bf16.mxu1 %v1534_v29 }
  0x50   :  { %1400 = vmatpush3.bf16.msra.mxu0 %v1524_v19 }
  0x51   :  { %1401 = vmatprep.subr.bf16.mxu0 %v1525_v20 }
  0x52   :  { %1420 = vmatpush3.bf16.msra.mxu1 %v1534_v29 }
  0x53   :  { %1421 = vmatprep.subr.bf16.mxu1 %v1535_v30 }
  0x54   :  { %1402 = vmatpush3.bf16.msra.mxu0 %v1525_v20 }
  0x55   :  { %1403 = vmatprep.subr.bf16.mxu0 %v1526_v22 }
  0x56   :  { %1422 = vmatpush3.bf16.msra.mxu1 %v1535_v30 }
  0x57   :  { %1423 = vmatprep.subr.bf16.mxu1 %v1536_v31 }
  0x58   :  { %1404 = vmatpush3.bf16.msra.mxu0 %v1526_v22 }
  0x59   :  { %1405 = vmatprep.subr.bf16.mxu0 %v1527_v23 }
  0x5a   :  { %1424 = vmatpush3.bf16.msra.mxu1 %v1536_v31  ;;  %v1240_v31 = vld [vmem:[%s1911_s2] ss:$0 sm:$0xff] }
  0x5b   :  { %1425 = vmatprep.subr.bf16.mxu1 %v1537_v32 }
  0x5c   :  { %1406 = vmatpush3.bf16.msra.mxu0 %v1527_v23 }
  0x5d   :  { %1407 = vmatprep.subr.bf16.mxu0 %v1528_v24 }
  0x5e   :  { %1426 = vmatpush3.bf16.msra.mxu1 %v1537_v32 }
  0x5f   :  { %1427 = vmatprep.subr.bf16.mxu1 %v1538_v33 }
  0x60   :  { %1408 = vmatpush3.bf16.msra.mxu0 %v1528_v24 }
  0x62   :  { %1428 = vmatpush3.bf16.msra.mxu1 %v1538_v33 }
  0x63   :  { %1410 = vmatmul.mubr.bf16.vlgmr.msra.gmra.mxu0 %v1530_v25 }
  0xe3   :  { %v1277_v34 = vpop.f32.mrf.mxu0 }
  0xe4   :  { %v1305_v35 = vpop.f32.mrf.mxu1 }
  0xe5   :  { %v1278_v36 = vpop.f32.mrf.mxu0 }
  0xe6   :  { %v1306_v37 = vpop.f32.mrf.mxu1  ;;  %v1279_v1 = vadd.f32 %v1278_v36, %v1277_v34 }
  0xe7   :  { %v1280_v38 = vpop.f32.mrf.mxu0  ;;  %v1307_v2 = vadd.f32 %v1306_v37, %v1305_v35 }
  0xe8   :  { %v1308_v39 = vpop.f32.mrf.mxu1 }
  0xe9   :  { %v1281_v40 = vpop.f32.mrf.mxu0  ;;  %v802_v10 = vadd.f32 %v1307_v2, %v1279_v1 }
  0xea   :  { %v1309_v42 = vpop.f32.mrf.mxu1  ;;  %v1282_v11 = vadd.f32 %v1281_v40, %v1280_v38  ;;  %v1241_v40 = vld [vmem:[%s1912_s3] ss:$0 sm:$0xff] }
  0xeb   :  { %v1283_v41 = vpop.f32.mrf.mxu0  ;;  %v1310_v12 = vadd.f32 %v1309_v42, %v1308_v39 }
  0xec   :  { %v1311_v43 = vpop.f32.mrf.mxu1 }
  0xed   :  { %v1284_v44 = vpop.f32.mrf.mxu0  ;;  %v805_v21 = vadd.f32 %v1310_v12, %v1282_v11 }
  0xee   :  { %v1312_v45 = vpop.f32.mrf.mxu1  ;;  %v1285_v63 = vadd.f32 %v1284_v44, %v1283_v41 }
  0xef   :  { %v1286_v46 = vpop.f32.mrf.mxu0  ;;  %v1313_v0 = vadd.f32 %v1312_v45, %v1311_v43 }
  0xf0   :  { %v1314_v47 = vpop.f32.mrf.mxu1 }
  0xf1   :  { %v1287_v48 = vpop.f32.mrf.mxu0  ;;  %v810_v9 = vadd.f32 %v1313_v0, %v1285_v63 }
  0xf2   :  { %v1315_v50 = vpop.f32.mrf.mxu1  ;;  %v1288_v6 = vadd.f32 %v1287_v48, %v1286_v46 }
  0xf3   :  { %v1316_v7 = vadd.f32 %v1315_v50, %v1314_v47 }
  0xf5   :  { %v813_v17 = vadd.f32 %v1316_v7, %v1288_v6 }
 0x103   :  { %v1333_v49 = vpop.f32.mrf.mxu0 }
 0x104   :  { %v1361_v52 = vpop.f32.mrf.mxu1 }
 0x105   :  { %v1334_v51 = vpop.f32.mrf.mxu0 }
 0x106   :  { %v1362_v54 = vpop.f32.mrf.mxu1  ;;  %v1335_v8 = vadd.f32 %v1334_v51, %v1333_v49 }
 0x107   :  { %v1336_v53 = vpop.f32.mrf.mxu0  ;;  %v1363_v19 = vadd.f32 %v1362_v54, %v1361_v52  ;;  %v1250_v54 = vld [vmem:[%s1913_s5] ss:$0 sm:$0xff] }
 0x108   :  { %v1364_v56 = vpop.f32.mrf.mxu1  ;;  %v851_v18 = vadd.f32 %v1335_v8, %v802_v10 }
 0x109   :  { %v1337_v55 = vpop.f32.mrf.mxu0 }
 0x10a   :  { %v1365_v58 = vpop.f32.mrf.mxu1  ;;  %v1338_v20 = vadd.f32 %v1337_v55, %v1336_v53  ;;  %v900_v28 = vadd.f32 %v1363_v19, %v851_v18  ;;  %v1260_v55 = vld [vmem:[%s1914_s7 + $0x8] sm:$0xff]  }
 0x10b   :  { %v1339_v57 = vpop.f32.mrf.mxu0  ;;  %v1366_v27 = vadd.f32 %v1365_v58, %v1364_v56  ;;  %v1253_v58 = vld [vmem:[%s1914_s7] sm:$0xff]  }
 0x10c   :  { %v1367_v60 = vpop.f32.mrf.mxu1  ;;  %v854_v26 = vadd.f32 %v1338_v20, %v805_v21  ;;  %v1254_v0 = vunpack.c.l.bf16 %v1253_v58  ;;  %v1255_v7 = vunpack.c.h.bf16 %v1253_v58 }
 0x10d   :  { %v1340_v59 = vpop.f32.mrf.mxu0 }
 0x10e   :  { %v1368_v62 = vpop.f32.mrf.mxu1  ;;  %v1341_v3 = vadd.f32 %v1340_v59, %v1339_v57  ;;  %v903_v37 = vadd.f32 %v1366_v27, %v854_v26  ;;  %v1251_v57 = vld [vmem:[%s1915_s6] ss:$0 sm:$0xff] }
 0x10f   :  { %v1342_v61 = vpop.f32.mrf.mxu0  ;;  %v1369_v15 = vadd.f32 %v1368_v62, %v1367_v60  ;;  %v1258_v60 = vunpack.c.l.bf16 %v1260_v55 }
 0x110   :  { %v1370_v5 = vpop.f32.mrf.mxu1  ;;  %v859_v14 = vadd.f32 %v1341_v3, %v810_v9 }
 0x111   :  { %v1343_v4 = vpop.f32.mrf.mxu0 }
 0x112   :  { %v1344_v13 = vadd.f32 %v1343_v4, %v1342_v61  ;;  %v1371_v16 = vpop.f32.mrf.mxu1  ;;  %v908_v24 = vadd.f32 %v1369_v15, %v859_v14 }
 0x113   :  { %v1372_v23 = vadd.f32 %v1371_v16, %v1370_v5  ;;  %v1259_v5 = vunpack.c.h.bf16 %v1260_v55 }
 0x114   :  { %v862_v22 = vadd.f32 %v1344_v13, %v813_v17 }
 0x116   :  { %v911_v33 = vadd.f32 %v1372_v23, %v862_v22 }
 0x123   :  { %v1411_v25 = vpop.f32.mrf.mxu0 }
 0x124   :  { %v957_v29 = vadd.f32 %v1411_v25, %v908_v24 }
 0x125   :  { %v948_v30 = vpop.f32.mrf.mxu0 }
 0x126   :  { %v949_v32 = vadd.f32 %v948_v30, %v900_v28  ;;  %v972_v38 = vmul.f32 %v1240_v31, %v957_v29 }
 0x127   :  { %v1412_v34 = vpop.f32.mrf.mxu0 }
 0x128   :  { %v970_v35 = vmul.f32 %v1240_v31, %v949_v32  ;;  %v960_v36 = vadd.f32 %v1412_v34, %v911_v33  ;;  %v983_v46 = vadd.f32 %v1241_v40, %v972_v38 }
 0x129   :  { %v951_v39 = vpop.f32.mrf.mxu0 }
 0x12a   :  { %v973_v41 = vmul.f32 %v1240_v31, %v960_v36  ;;  %v952_v42 = vadd.f32 %v951_v39, %v903_v37  ;;  %v981_v43 = vadd.f32 %v1241_v40, %v970_v35  ;;  %v987_v51 = vmax.f32 %v983_v46, 0.0 }
 0x12c   :  { %v984_v44 = vadd.f32 %v1241_v40, %v973_v41  ;;  %v971_v45 = vmul.f32 %v1240_v31, %v952_v42  ;;  %v985_v49 = vmax.f32 %v981_v43, 0.0 }
 0x12e   :  { %v982_v47 = vadd.f32 %v1241_v40, %v971_v45  ;;  %v988_v48 = vmax.f32 %v984_v44, 0.0 }
 0x130   :  { %v986_v50 = vmax.f32 %v982_v47, 0.0  ;;  %v990_v53 = vpack.c.bf16 %v988_v48, %v987_v51 }
 0x132   :  { %v989_v52 = vpack.c.bf16 %v986_v50, %v985_v49 }
 0x134   :  { %1429 = vmatprep.mubr.bf16.mxu1 %v989_v52 }
 0x135   :  { %1430 = vmatmul.mubr.bf16.vlgmr.msra.gmra.mxu1 %v990_v53 }
 0x1f5   :  { %v1431_v56 = vpop.f32.mrf.mxu1 }
 0x1f6   :  { %v1113_v59 = vmul.f32 %v1431_v56, %v1250_v54 }
 0x1f7   :  { %v1089_v61 = vpop.f32.mrf.mxu1 }
 0x1f8   :  { %v1124_v62 = vadd.f32 %v1251_v57, %v1113_v59  ;;  %v1111_v63 = vmul.f32 %v1250_v54, %v1089_v61 }
 0x1f9   :  { %v1432_v1 = vpop.f32.mrf.mxu1 }
 0x1fa   :  { %v1136_v2 = vadd.f32 %v1258_v60, %v1124_v62  ;;  %v1122_v3 = vadd.f32 %v1251_v57, %v1111_v63  ;;  %v1114_v4 = vmul.f32 %v1432_v1, %v1250_v54 }
 0x1fb   :  { %v1092_v6 = vpop.f32.mrf.mxu1 }
 0x1fc   :  { %v1140_v8 = vmax.f32 %v1136_v2, 0.0  ;;  %v1134_v9 = vadd.f32 %v1254_v0, %v1122_v3  ;;  %v1125_v10 = vadd.f32 %v1251_v57, %v1114_v4  ;;  %v1112_v11 = vmul.f32 %v1250_v54, %v1092_v6 }
 0x1fe   :  { %1144 = vst [vmem:[%s1916_s8 + $0x10] sm:$0xff] %v1140_v8  ;;  %v1138_v12 = vmax.f32 %v1134_v9, 0.0  ;;  %v1137_v13 = vadd.f32 %v1259_v5, %v1125_v10  ;;  %v1123_v14 = vadd.f32 %v1251_v57, %v1112_v11 }
 0x200   :  { %1142 = vst [vmem:[%s1916_s8] sm:$0xff] %v1138_v12  ;;  %v1141_v15 = vmax.f32 %v1137_v13, 0.0  ;;  %v1135_v16 = vadd.f32 %v1255_v7, %v1123_v14 }
 0x202   :  { %1145 = vst [vmem:[%s1916_s8 + $0x18] sm:$0xff] %v1141_v15  ;;  %v1139_v17 = vmax.f32 %v1135_v16, 0.0 }
 0x204   :  { %1143 = vst [vmem:[%s1916_s8 + $0x8] sm:$0xff] %v1139_v17 }

// kernel: _lambda_.9
= control target key start
LH: loop header
LB: loop body
LE: loop exit
PB: predicated region body
PF: predicated region fallthrough
CT: control target
= control target key end

     0   :  { %s2177_s1 = inlined_call_operand.vmem [shape: bf16[1152,128], index: 1, kind: input, shape index: {}]   ;;  %s2178_s0 = inlined_call_operand.vmem [shape: bf16[32,1152], index: 0, kind: input, shape index: {}]   ;;  %s2179_s8 = inlined_call_operand.vmem [shape: bf16[128,128], index: 8, kind: input, shape index: {}]   ;;  %s2180_s4 = inlined_call_operand.vmem [shape: bf16[128,128], index: 4, kind: input, shape index: {}]   ;;  %s2181_s7 = inlined_call_operand.vmem [shape: bf16[32,128], index: 7, kind: input, shape index: {}]   ;;  %s2182_s2 = inlined_call_operand.vmem [shape: f32[1,128], index: 2, kind: input, shape index: {}]   ;;  %s2183_s3 = inlined_call_operand.vmem [shape: f32[1,128], index: 3, kind: input, shape index: {}]   ;;  %s2184_s9 = inlined_call_operand.vmem [shape: f32[1,128], index: 9, kind: input, shape index: {}]   ;;  %s2185_s5 = inlined_call_operand.vmem [shape: f32[1,128], index: 5, kind: input, shape index: {}]   ;;  %s2186_s10 = inlined_call_operand.vmem [shape: f32[1,128], index: 10, kind: input, shape index: {}]   ;;  %s2187_s6 = inlined_call_operand.vmem [shape: f32[1,128], index: 6, kind: input, shape index: {}]   ;;  %s2188_s11 = inlined_call_operand.vmem [shape: bf16[32,128], index: 11, kind: output, shape index: {}]  }
   0x1   :  { %v1653_v0 = vld [vmem:[%s2177_s1 + $0x78] sm:$0xff]   ;;  %v1657_v4 = vld [vmem:[%s2177_s1 + $0x70] sm:$0xff]   ;;  %v1661_v8 = vld [vmem:[%s2177_s1 + $0x68] sm:$0xff]  }
   0x2   :  { %v1654_v1 = vld [vmem:[%s2177_s1 + $0xf8] sm:$0xff]   ;;  %1451 = vmatprep.subr.bf16.mxu0 %v1653_v0  ;;  %v1658_v5 = vld [vmem:[%s2177_s1 + $0xf0] sm:$0xff]   ;;  %v1662_v9 = vld [vmem:[%s2177_s1 + $0xe8] sm:$0xff]  }
   0x3   :  { %v1655_v2 = vld [vmem:[%s2177_s1 + $0x38] sm:$0xff]   ;;  %1479 = vmatprep.subr.bf16.mxu1 %v1654_v1  ;;  %v1659_v6 = vld [vmem:[%s2177_s1 + $0x30] sm:$0xff]   ;;  %v1663_v10 = vld [vmem:[%s2177_s1 + $0x28] sm:$0xff]  }
   0x4   :  { %v1656_v3 = vld [vmem:[%s2177_s1 + $0xb8] sm:$0xff]   ;;  %1452 = vmatpush3.bf16.msra.mxu0 %v1655_v2  ;;  %v1660_v7 = vld [vmem:[%s2177_s1 + $0xb0] sm:$0xff]   ;;  %v1664_v11 = vld [vmem:[%s2177_s1 + $0xa8] sm:$0xff]  }
   0x5   :  { %1480 = vmatpush3.bf16.msra.mxu1 %v1656_v3  ;;  %1453 = vmatprep.subr.bf16.mxu0 %v1657_v4  ;;  %v1665_v12 = vld [vmem:[%s2177_s1 + $0x60] sm:$0xff]   ;;  %v1669_v16 = vld [vmem:[%s2177_s1 + $0x58] sm:$0xff]   ;;  %v1673_v20 = vld [vmem:[%s2177_s1 + $0x50] sm:$0xff]  }
   0x6   :  { %1481 = vmatprep.subr.bf16.mxu1 %v1658_v5  ;;  %v1666_v13 = vld [vmem:[%s2177_s1 + $0xe0] sm:$0xff]   ;;  %v1670_v17 = vld [vmem:[%s2177_s1 + $0xd8] sm:$0xff]   ;;  %v1674_v21 = vld [vmem:[%s2177_s1 + $0xd0] sm:$0xff]  }
   0x7   :  { %v1667_v14 = vld [vmem:[%s2177_s1 + $0x20] sm:$0xff]   ;;  %v1671_v18 = vld [vmem:[%s2177_s1 + $0x18] sm:$0xff]   ;;  %v1675_v22 = vld [vmem:[%s2177_s1 + $0x10] sm:$0xff]  }
   0x8   :  { %1454 = vmatpush3.bf16.msra.mxu0 %v1659_v6  ;;  %v1668_v15 = vld [vmem:[%s2177_s1 + $0xa0] sm:$0xff]   ;;  %v1672_v19 = vld [vmem:[%s2177_s1 + $0x98] sm:$0xff]   ;;  %v1676_v23 = vld [vmem:[%s2177_s1 + $0x90] sm:$0xff]  }
   0x9   :  { %1482 = vmatpush3.bf16.msra.mxu1 %v1660_v7  ;;  %1455 = vmatprep.subr.bf16.mxu0 %v1661_v8  ;;  %v1677_v24 = vld [vmem:[%s2177_s1 + $0x48] sm:$0xff]   ;;  %v1681_v28 = vld [vmem:[%s2177_s1 + $0x40] sm:$0xff]   ;;  %v1691_v36 = vld [vmem:[%s2177_s1 + $0x178] sm:$0xff]  }
   0xa   :  { %1483 = vmatprep.subr.bf16.mxu1 %v1662_v9  ;;  %v1678_v25 = vld [vmem:[%s2177_s1 + $0xc8] sm:$0xff]   ;;  %v1682_v29 = vld [vmem:[%s2177_s1 + $0xc0] sm:$0xff]   ;;  %v1692_v37 = vld [vmem:[%s2177_s1 + $0x138] sm:$0xff]  }
   0xb   :  { %v1679_v26 = vld [vmem:[%s2177_s1 + $0x8] sm:$0xff]   ;;  %v1683_v30 = vld [vmem:[%s2177_s1] sm:$0xff]   ;;  %v1693_v38 = vld [vmem:[%s2177_s1 + $0x1f8] sm:$0xff]  }
   0xc   :  { %1456 = vmatpush3.bf16.msra.mxu0 %v1663_v10  ;;  %v1680_v27 = vld [vmem:[%s2177_s1 + $0x88] sm:$0xff]   ;;  %v1684_v31 = vld [vmem:[%s2177_s1 + $0x80] sm:$0xff]   ;;  %v1694_v39 = vld [vmem:[%s2177_s1 + $0x1b8] sm:$0xff]  }
   0xd   :  { %1484 = vmatpush3.bf16.msra.mxu1 %v1664_v11  ;;  %1457 = vmatprep.subr.bf16.mxu0 %v1665_v12  ;;  %v1685_v32 = vld [vmem:[%s2178_s0] ss:$36 sps:$4 sm:$0xff]   ;;  %v1688_v34 = vld [vmem:[%s2178_s0 + $0x8] ss:$36 sps:$4 sm:$0xff]   ;;  %v1695_v40 = vld [vmem:[%s2177_s1 + $0x170] sm:$0xff]  }
   0xe   :  { %1485 = vmatprep.subr.bf16.mxu1 %v1666_v13  ;;  %v1687_v33 = vld [vmem:[%s2178_s0 + $0x4] ss:$36 sps:$4 sm:$0xff]   ;;  %v1690_v35 = vld [vmem:[%s2178_s0 + $0xc] ss:$36 sps:$4 sm:$0xff]   ;;  %v1707_v52 = vld [vmem:[%s2177_s1 + $0x158] sm:$0xff]  }
   0xf   :  { %759 = vmatprep.mubr.bf16.mxu0 %v1687_v33  ;;  %808 = vmatprep.mubr.bf16.mxu1 %v1690_v35  ;;  %v1696_v41 = vld [vmem:[%s2177_s1 + $0x130] sm:$0xff]   ;;  %v1699_v44 = vld [vmem:[%s2177_s1 + $0x168] sm:$0xff]   ;;  %v1703_v48 = vld [vmem:[%s2177_s1 + $0x160] sm:$0xff]  }
  0x10   :  { %1458 = vmatpush3.bf16.msra.mxu0 %v1667_v14  ;;  %v1697_v42 = vld [vmem:[%s2177_s1 + $0x1f0] sm:$0xff]   ;;  %v1700_v45 = vld [vmem:[%s2177_s1 + $0x128] sm:$0xff]   ;;  %v1704_v49 = vld [vmem:[%s2177_s1 + $0x120] sm:$0xff]  }
  0x11   :  { %1486 = vmatpush3.bf16.msra.mxu1 %v1668_v15  ;;  %1459 = vmatprep.subr.bf16.mxu0 %v1669_v16  ;;  %v1698_v43 = vld [vmem:[%s2177_s1 + $0x1b0] sm:$0xff]   ;;  %v1701_v46 = vld [vmem:[%s2177_s1 + $0x1e8] sm:$0xff]   ;;  %v1705_v50 = vld [vmem:[%s2177_s1 + $0x1e0] sm:$0xff]  }
  0x12   :  { %1487 = vmatprep.subr.bf16.mxu1 %v1670_v17  ;;  %v1702_v47 = vld [vmem:[%s2177_s1 + $0x1a8] sm:$0xff]   ;;  %v1706_v51 = vld [vmem:[%s2177_s1 + $0x1a0] sm:$0xff]   ;;  %v1708_v53 = vld [vmem:[%s2177_s1 + $0x118] sm:$0xff]  }
  0x13   :  { %v1709_v54 = vld [vmem:[%s2178_s0 + $0x4c] ss:$36 sps:$4 sm:$0xff]   ;;  %v1711_v55 = vld [vmem:[%s2178_s0 + $0x54] ss:$36 sps:$4 sm:$0xff]   ;;  %v1725_v4 = vld [vmem:[%s2177_s1 + $0x140] sm:$0xff]  }
  0x14   :  { %1460 = vmatpush3.bf16.msra.mxu0 %v1671_v18  ;;  %v1713_v56 = vld [vmem:[%s2177_s1 + $0x1d8] sm:$0xff]   ;;  %v1714_v57 = vld [vmem:[%s2178_s0 + $0x48] ss:$36 sps:$4 sm:$0xff]   ;;  %v1715_v58 = vld [vmem:[%s2178_s0 + $0x50] ss:$36 sps:$4 sm:$0xff]  }
  0x15   :  { %1488 = vmatpush3.bf16.msra.mxu1 %v1672_v19  ;;  %1461 = vmatprep.subr.bf16.mxu0 %v1673_v20  ;;  %v1716_v59 = vld [vmem:[%s2177_s1 + $0x198] sm:$0xff]   ;;  %v1717_v60 = vld [vmem:[%s2177_s1 + $0x150] sm:$0xff]   ;;  %v1721_v0 = vld [vmem:[%s2177_s1 + $0x148] sm:$0xff]  }
  0x16   :  { %1489 = vmatprep.subr.bf16.mxu1 %v1674_v21  ;;  %v1718_v61 = vld [vmem:[%s2177_s1 + $0x110] sm:$0xff]   ;;  %v1722_v1 = vld [vmem:[%s2177_s1 + $0x108] sm:$0xff]   ;;  %v1726_v5 = vld [vmem:[%s2177_s1 + $0x100] sm:$0xff]  }
  0x17   :  { %v1719_v62 = vld [vmem:[%s2177_s1 + $0x1d0] sm:$0xff]   ;;  %v1723_v2 = vld [vmem:[%s2177_s1 + $0x1c8] sm:$0xff]   ;;  %v1727_v6 = vld [vmem:[%s2177_s1 + $0x1c0] sm:$0xff]  }
  0x18   :  { %1462 = vmatpush3.bf16.msra.mxu0 %v1675_v22  ;;  %v1720_v63 = vld [vmem:[%s2177_s1 + $0x190] sm:$0xff]   ;;  %v1724_v3 = vld [vmem:[%s2177_s1 + $0x188] sm:$0xff]   ;;  %v1731_v9 = vld [vmem:[%s2177_s1 + $0x180] sm:$0xff]  }
  0x19   :  { %1490 = vmatpush3.bf16.msra.mxu1 %v1676_v23  ;;  %1463 = vmatprep.subr.bf16.mxu0 %v1677_v24  ;;  %v1728_v7 = vld [vmem:[%s2178_s0 + $0x10] ss:$36 sps:$4 sm:$0xff]   ;;  %v1732_v10 = vld [vmem:[%s2177_s1 + $0x238] sm:$0xff]   ;;  %v1740_v16 = vld [vmem:[%s2177_s1 + $0x228] sm:$0xff]  }
  0x1a   :  { %1491 = vmatprep.subr.bf16.mxu1 %v1678_v25  ;;  %v1730_v8 = vld [vmem:[%s2178_s0 + $0x14] ss:$36 sps:$4 sm:$0xff]   ;;  %v1735_v12 = vld [vmem:[%s2178_s0 + $0x1c] ss:$36 sps:$4 sm:$0xff]   ;;  %v1741_v17 = vld [vmem:[%s2178_s0 + $0x64] ss:$36 sps:$4 sm:$0xff]  }
  0x1b   :  { %v1733_v11 = vld [vmem:[%s2178_s0 + $0x18] ss:$36 sps:$4 sm:$0xff]   ;;  %v1736_v13 = vld [vmem:[%s2177_s1 + $0x230] sm:$0xff]   ;;  %v1743_v18 = vld [vmem:[%s2178_s0 + $0x60] ss:$36 sps:$4 sm:$0xff]  }
  0x1c   :  { %1464 = vmatpush3.bf16.msra.mxu0 %v1679_v26  ;;  %v1737_v14 = vld [vmem:[%s2178_s0 + $0x5c] ss:$36 sps:$4 sm:$0xff]   ;;  %v1746_v22 = vld [vmem:[%s2177_s1 + $0x210] sm:$0xff]   ;;  %v1747_v23 = vld [vmem:[%s2177_s1 + $0x208] sm:$0xff]  }
  0x1d   :  { %1492 = vmatpush3.bf16.msra.mxu1 %v1680_v27  ;;  %1465 = vmatprep.subr.bf16.mxu0 %v1681_v28  ;;  %v1739_v15 = vld [vmem:[%s2178_s0 + $0x58] ss:$36 sps:$4 sm:$0xff]   ;;  %v1744_v19 = vld [vmem:[%s2177_s1 + $0x220] sm:$0xff]   ;;  %v1750_v25 = vld [vmem:[%s2178_s0 + $0x68] ss:$36 sps:$4 sm:$0xff]  }
  0x1e   :  { %1493 = vmatprep.subr.bf16.mxu1 %v1682_v29  ;;  %v1745_v20 = vld [vmem:[%s2177_s1 + $0x218] sm:$0xff]   ;;  %v1749_v21 = vld [vmem:[%s2178_s0 + $0x20] ss:$36 sps:$4 sm:$0xff]   ;;  %v1752_v27 = vld [vmem:[%s2179_s8 + $0x30] sm:$0xff]  }
  0x1f   :  { %v1748_v24 = vld [vmem:[%s2177_s1 + $0x200] sm:$0xff]   ;;  %v1751_v26 = vld [vmem:[%s2179_s8 + $0x38] sm:$0xff]   ;;  %v1754_v29 = vld [vmem:[%s2179_s8 + $0x28] sm:$0xff]  }
  0x20   :  { %1466 = vmatpush3.bf16.msra.mxu0 %v1683_v30  ;;  %v1753_v28 = vld [vmem:[%s2180_s4 + $0x38] sm:$0xff]   ;;  %v1755_v30 = vld [vmem:[%s2180_s4 + $0x30] sm:$0xff]  }
  0x21   :  { %1494 = vmatpush3.bf16.msra.mxu1 %v1684_v31  ;;  %1507 = vmatprep.subr.bf16.mxu0 %v1691_v36  ;;  %v1756_v31 = vld [vmem:[%s2179_s8 + $0x20] sm:$0xff]   ;;  %v1758_v33 = vld [vmem:[%s2179_s8 + $0x18] sm:$0xff]   ;;  %v1760_v35 = vld [vmem:[%s2179_s8 + $0x10] sm:$0xff]  }
  0x22   :  { %1535 = vmatprep.subr.bf16.mxu1 %v1693_v38  ;;  %v1761_v36 = vld [vmem:[%s2180_s4 + $0x18] sm:$0xff]   ;;  %v1763_v38 = vld [vmem:[%s2180_s4 + $0x10] sm:$0xff]  }
  0x23   :  { %760 = vmatmul.mubr.bf16.vlgmr.msra.gmra.mxu0 %v1685_v32  ;;  %v1757_v32 = vld [vmem:[%s2180_s4 + $0x28] sm:$0xff]  }
  0x24   :  { %809 = vmatmul.mubr.bf16.vlgmr.msra.gmra.mxu1 %v1688_v34  ;;  %1508 = vmatpush3.bf16.msra.mxu0 %v1692_v37  ;;  %v1759_v34 = vld [vmem:[%s2180_s4 + $0x20] sm:$0xff]   ;;  %v1762_v37 = vld [vmem:[%s2179_s8 + $0x8] sm:$0xff]  }
  0x25   :  { %1536 = vmatpush3.bf16.msra.mxu1 %v1694_v39  ;;  %1509 = vmatprep.subr.bf16.mxu0 %v1695_v40  ;;  %v1764_v39 = vld [vmem:[%s2179_s8] sm:$0xff]   ;;  %v1765_v40 = vld [vmem:[%s2180_s4 + $0x8] sm:$0xff]  }
  0x26   :  { %1537 = vmatprep.subr.bf16.mxu1 %v1697_v42  ;;  %767 = vmatprep.mubr.bf16.mxu0 %v1709_v54  ;;  %v1767_v42 = vld [vmem:[%s2181_s7 + $0x8] sm:$0xff]  }
  0x27   :  { %816 = vmatprep.mubr.bf16.mxu1 %v1711_v55 }
  0x28   :  { %1510 = vmatpush3.bf16.msra.mxu0 %v1696_v41  ;;  %v1766_v41 = vld [vmem:[%s2181_s7] sm:$0xff]  }
  0x29   :  { %1538 = vmatpush3.bf16.msra.mxu1 %v1698_v43  ;;  %1511 = vmatprep.subr.bf16.mxu0 %v1699_v44  ;;  %v1768_v43 = vld [vmem:[%s2180_s4] sm:$0xff]  }
  0x2a   :  { %1539 = vmatprep.subr.bf16.mxu1 %v1701_v46 }
  0x2b   :  { %768 = vmatmul.mubr.bf16.gmra.mxu0 %v1714_v57 }
  0x2c   :  { %1512 = vmatpush3.bf16.msra.mxu0 %v1700_v45  ;;  %817 = vmatmul.mubr.bf16.gmra.mxu1 %v1715_v58 }
  0x2d   :  { %1540 = vmatpush3.bf16.msra.mxu1 %v1702_v47  ;;  %1513 = vmatprep.subr.bf16.mxu0 %v1703_v48 }
  0x2e   :  { %1541 = vmatprep.subr.bf16.mxu1 %v1705_v50  ;;  %857 = vmatprep.mubr.bf16.mxu0 %v1730_v8 }
  0x2f   :  { %906 = vmatprep.mubr.bf16.mxu1 %v1735_v12 }
  0x30   :  { %1514 = vmatpush3.bf16.msra.mxu0 %v1704_v49 }
  0x31   :  { %1542 = vmatpush3.bf16.msra.mxu1 %v1706_v51  ;;  %1515 = vmatprep.subr.bf16.mxu0 %v1707_v52 }
  0x32   :  { %1543 = vmatprep.subr.bf16.mxu1 %v1713_v56 }
  0x34   :  { %1516 = vmatpush3.bf16.msra.mxu0 %v1708_v53 }
  0x35   :  { %1544 = vmatpush3.bf16.msra.mxu1 %v1716_v59  ;;  %1517 = vmatprep.subr.bf16.mxu0 %v1717_v60 }
  0x36   :  { %1545 = vmatprep.subr.bf16.mxu1 %v1719_v62 }
  0x38   :  { %1518 = vmatpush3.bf16.msra.mxu0 %v1718_v61 }
  0x39   :  { %1546 = vmatpush3.bf16.msra.mxu1 %v1720_v63  ;;  %1519 = vmatprep.subr.bf16.mxu0 %v1721_v0 }
  0x3a   :  { %1547 = vmatprep.subr.bf16.mxu1 %v1723_v2 }
  0x3c   :  { %1520 = vmatpush3.bf16.msra.mxu0 %v1722_v1 }
  0x3d   :  { %1548 = vmatpush3.bf16.msra.mxu1 %v1724_v3  ;;  %1521 = vmatprep.subr.bf16.mxu0 %v1725_v4 }
  0x3e   :  { %1549 = vmatprep.subr.bf16.mxu1 %v1727_v6 }
  0x40   :  { %1522 = vmatpush3.bf16.msra.mxu0 %v1726_v5 }
  0x41   :  { %1550 = vmatpush3.bf16.msra.mxu1 %v1731_v9  ;;  %1593 = vmatprep.subr.bf16.mxu0 %v1732_v10 }
  0x42   :  { %1613 = vmatprep.subr.bf16.mxu1 %v1753_v28 }
  0x43   :  { %858 = vmatmul.mubr.bf16.vlgmr.msra.gmra.mxu0 %v1728_v7 }
  0x44   :  { %1594 = vmatpush3.bf16.msra.mxu0 %v1732_v10  ;;  %907 = vmatmul.mubr.bf16.vlgmr.msra.gmra.mxu1 %v1733_v11 }
  0x45   :  { %1595 = vmatprep.subr.bf16.mxu0 %v1736_v13  ;;  %865 = vmatprep.mubr.bf16.mxu0 %v1737_v14 }
  0x46   :  { %914 = vmatprep.mubr.bf16.mxu1 %v1741_v17  ;;  %1614 = vmatpush3.bf16.msra.mxu1 %v1753_v28 }
  0x47   :  { %1615 = vmatprep.subr.bf16.mxu1 %v1755_v30 }
  0x48   :  { %1596 = vmatpush3.bf16.msra.mxu0 %v1736_v13 }
  0x49   :  { %1597 = vmatprep.subr.bf16.mxu0 %v1740_v16 }
  0x4a   :  { %1616 = vmatpush3.bf16.msra.mxu1 %v1755_v30 }
  0x4b   :  { %866 = vmatmul.mubr.bf16.gmra.mxu0 %v1739_v15  ;;  %1617 = vmatprep.subr.bf16.mxu1 %v1757_v32 }
  0x4c   :  { %1598 = vmatpush3.bf16.msra.mxu0 %v1740_v16  ;;  %915 = vmatmul.mubr.bf16.gmra.mxu1 %v1743_v18 }
  0x4d   :  { %1599 = vmatprep.subr.bf16.mxu0 %v1744_v19  ;;  %1609 = vmatprep.mubr.bf16.mxu0 %v1749_v21 }
  0x4e   :  { %1618 = vmatpush3.bf16.msra.mxu1 %v1757_v32 }
  0x4f   :  { %1619 = vmatprep.subr.bf16.mxu1 %v1759_v34 }
  0x50   :  { %1600 = vmatpush3.bf16.msra.mxu0 %v1744_v19 }
  0x51   :  { %1601 = vmatprep.subr.bf16.mxu0 %v1745_v20 }
  0x52   :  { %1620 = vmatpush3.bf16.msra.mxu1 %v1759_v34 }
  0x53   :  { %1621 = vmatprep.subr.bf16.mxu1 %v1761_v36 }
  0x54   :  { %1602 = vmatpush3.bf16.msra.mxu0 %v1745_v20 }
  0x55   :  { %1603 = vmatprep.subr.bf16.mxu0 %v1746_v22 }
  0x56   :  { %1622 = vmatpush3.bf16.msra.mxu1 %v1761_v36 }
  0x57   :  { %1623 = vmatprep.subr.bf16.mxu1 %v1763_v38 }
  0x58   :  { %1604 = vmatpush3.bf16.msra.mxu0 %v1746_v22 }
  0x59   :  { %1605 = vmatprep.subr.bf16.mxu0 %v1747_v23 }
  0x5a   :  { %1624 = vmatpush3.bf16.msra.mxu1 %v1763_v38 }
  0x5b   :  { %1625 = vmatprep.subr.bf16.mxu1 %v1765_v40 }
  0x5c   :  { %1606 = vmatpush3.bf16.msra.mxu0 %v1747_v23 }
  0x5d   :  { %1607 = vmatprep.subr.bf16.mxu0 %v1748_v24 }
  0x5e   :  { %1626 = vmatpush3.bf16.msra.mxu1 %v1765_v40 }
  0x5f   :  { %1627 = vmatprep.subr.bf16.mxu1 %v1768_v43 }
  0x60   :  { %1608 = vmatpush3.bf16.msra.mxu0 %v1748_v24 }
  0x61   :  { %1633 = vmatprep.subr.bf16.mxu0 %v1751_v26 }
  0x62   :  { %1628 = vmatpush3.bf16.msra.mxu1 %v1768_v43 }
  0x63   :  { %1610 = vmatmul.mubr.bf16.vlgmr.msra.gmra.mxu0 %v1750_v25 }
  0x64   :  { %1634 = vmatpush3.bf16.msra.mxu0 %v1751_v26  ;;  %1649 = vmatprep.mubr.bf16.mxu0 %v1766_v41  ;;  %v1408_v41 = vld [vmem:[%s2182_s2] ss:$0 sm:$0xff] }
  0x65   :  { %1635 = vmatprep.subr.bf16.mxu0 %v1752_v27 }
  0x68   :  { %1636 = vmatpush3.bf16.msra.mxu0 %v1752_v27 }
  0x69   :  { %1637 = vmatprep.subr.bf16.mxu0 %v1754_v29 }
  0x6c   :  { %1638 = vmatpush3.bf16.msra.mxu0 %v1754_v29 }
  0x6d   :  { %1639 = vmatprep.subr.bf16.mxu0 %v1756_v31 }
  0x70   :  { %1640 = vmatpush3.bf16.msra.mxu0 %v1756_v31 }
  0x71   :  { %1641 = vmatprep.subr.bf16.mxu0 %v1758_v33 }
  0x74   :  { %1642 = vmatpush3.bf16.msra.mxu0 %v1758_v33 }
  0x75   :  { %1643 = vmatprep.subr.bf16.mxu0 %v1760_v35 }
  0x78   :  { %1644 = vmatpush3.bf16.msra.mxu0 %v1760_v35 }
  0x79   :  { %1645 = vmatprep.subr.bf16.mxu0 %v1762_v37 }
  0x7c   :  { %1646 = vmatpush3.bf16.msra.mxu0 %v1762_v37 }
  0x7d   :  { %1647 = vmatprep.subr.bf16.mxu0 %v1764_v39 }
  0x80   :  { %1648 = vmatpush3.bf16.msra.mxu0 %v1764_v39 }
  0x83   :  { %1650 = vmatmul.mubr.bf16.vlgmr.msra.gmra.mxu0 %v1767_v42 }
  0xe3   :  { %v1467_v44 = vpop.f32.mrf.mxu0 }
  0xe4   :  { %v1495_v45 = vpop.f32.mrf.mxu1 }
  0xe5   :  { %v1468_v46 = vpop.f32.mrf.mxu0 }
  0xe6   :  { %v1496_v47 = vpop.f32.mrf.mxu1  ;;  %v1469_v11 = vadd.f32 %v1468_v46, %v1467_v44 }
  0xe7   :  { %v1470_v48 = vpop.f32.mrf.mxu0  ;;  %v1497_v12 = vadd.f32 %v1496_v47, %v1495_v45 }
  0xe8   :  { %v1498_v49 = vpop.f32.mrf.mxu1 }
  0xe9   :  { %v1471_v50 = vpop.f32.mrf.mxu0  ;;  %v811_v20 = vadd.f32 %v1497_v12, %v1469_v11 }
  0xea   :  { %v1499_v52 = vpop.f32.mrf.mxu1  ;;  %v1472_v21 = vadd.f32 %v1471_v50, %v1470_v48  ;;  %v1409_v50 = vld [vmem:[%s2183_s3] ss:$0 sm:$0xff] }
  0xeb   :  { %v1473_v51 = vpop.f32.mrf.mxu0  ;;  %v1500_v22 = vadd.f32 %v1499_v52, %v1498_v49 }
  0xec   :  { %v1501_v53 = vpop.f32.mrf.mxu1 }
  0xed   :  { %v1474_v54 = vpop.f32.mrf.mxu0  ;;  %v814_v31 = vadd.f32 %v1500_v22, %v1472_v21 }
  0xee   :  { %v1502_v55 = vpop.f32.mrf.mxu1  ;;  %v1475_v9 = vadd.f32 %v1474_v54, %v1473_v51 }
  0xef   :  { %v1476_v56 = vpop.f32.mrf.mxu0  ;;  %v1503_v10 = vadd.f32 %v1502_v55, %v1501_v53 }
  0xf0   :  { %v1504_v57 = vpop.f32.mrf.mxu1 }
  0xf1   :  { %v1477_v58 = vpop.f32.mrf.mxu0  ;;  %v819_v19 = vadd.f32 %v1503_v10, %v1475_v9 }
  0xf2   :  { %v1505_v60 = vpop.f32.mrf.mxu1  ;;  %v1478_v16 = vadd.f32 %v1477_v58, %v1476_v56 }
  0xf3   :  { %v1506_v17 = vadd.f32 %v1505_v60, %v1504_v57 }
  0xf5   :  { %v822_v27 = vadd.f32 %v1506_v17, %v1478_v16 }
 0x103   :  { %v1523_v59 = vpop.f32.mrf.mxu0 }
 0x104   :  { %v1551_v62 = vpop.f32.mrf.mxu1 }
 0x105   :  { %v1524_v61 = vpop.f32.mrf.mxu0 }
 0x106   :  { %v1552_v0 = vpop.f32.mrf.mxu1  ;;  %v1525_v18 = vadd.f32 %v1524_v61, %v1523_v59 }
 0x107   :  { %v1526_v63 = vpop.f32.mrf.mxu0  ;;  %v1553_v29 = vadd.f32 %v1552_v0, %v1551_v62 }
 0x108   :  { %v1554_v2 = vpop.f32.mrf.mxu1  ;;  %v860_v28 = vadd.f32 %v1525_v18, %v811_v20 }
 0x109   :  { %v1527_v1 = vpop.f32.mrf.mxu0 }
 0x10a   :  { %v1555_v4 = vpop.f32.mrf.mxu1  ;;  %v1528_v30 = vadd.f32 %v1527_v1, %v1526_v63  ;;  %v909_v38 = vadd.f32 %v1553_v29, %v860_v28 }
 0x10b   :  { %v1529_v3 = vpop.f32.mrf.mxu0  ;;  %v1556_v37 = vadd.f32 %v1555_v4, %v1554_v2  ;;  %v1430_v2 = vld [vmem:[%s2184_s9] ss:$0 sm:$0xff] }
 0x10c   :  { %v1557_v6 = vpop.f32.mrf.mxu1  ;;  %v863_v36 = vadd.f32 %v1528_v30, %v814_v31  ;;  %v1418_v4 = vld [vmem:[%s2185_s5] ss:$0 sm:$0xff] }
 0x10d   :  { %v1530_v5 = vpop.f32.mrf.mxu0 }
 0x10e   :  { %v1558_v8 = vpop.f32.mrf.mxu1  ;;  %v1531_v13 = vadd.f32 %v1530_v5, %v1529_v3  ;;  %v912_v47 = vadd.f32 %v1556_v37, %v863_v36 }
 0x10f   :  { %v1532_v7 = vpop.f32.mrf.mxu0  ;;  %v1559_v25 = vadd.f32 %v1558_v8, %v1557_v6  ;;  %v1431_v6 = vld [vmem:[%s2186_s10] ss:$0 sm:$0xff] }
 0x110   :  { %v1560_v15 = vpop.f32.mrf.mxu1  ;;  %v868_v24 = vadd.f32 %v1531_v13, %v819_v19  ;;  %v1419_v8 = vld [vmem:[%s2187_s6] ss:$0 sm:$0xff] }
 0x111   :  { %v1533_v14 = vpop.f32.mrf.mxu0 }
 0x112   :  { %v1534_v23 = vadd.f32 %v1533_v14, %v1532_v7  ;;  %v1561_v26 = vpop.f32.mrf.mxu1  ;;  %v917_v34 = vadd.f32 %v1559_v25, %v868_v24 }
 0x113   :  { %v1562_v33 = vadd.f32 %v1561_v26, %v1560_v15 }
 0x114   :  { %v871_v32 = vadd.f32 %v1534_v23, %v822_v27 }
 0x116   :  { %v920_v43 = vadd.f32 %v1562_v33, %v871_v32 }
 0x123   :  { %v1611_v35 = vpop.f32.mrf.mxu0 }
 0x124   :  { %v966_v39 = vadd.f32 %v1611_v35, %v917_v34 }
 0x125   :  { %v957_v40 = vpop.f32.mrf.mxu0 }
 0x126   :  { %v958_v42 = vadd.f32 %v957_v40, %v909_v38  ;;  %v981_v48 = vmul.f32 %v1408_v41, %v966_v39 }
 0x127   :  { %v1612_v44 = vpop.f32.mrf.mxu0 }
 0x128   :  { %v979_v45 = vmul.f32 %v1408_v41, %v958_v42  ;;  %v969_v46 = vadd.f32 %v1612_v44, %v920_v43  ;;  %v992_v56 = vadd.f32 %v1409_v50, %v981_v48 }
 0x129   :  { %v960_v49 = vpop.f32.mrf.mxu0 }
 0x12a   :  { %v982_v51 = vmul.f32 %v1408_v41, %v969_v46  ;;  %v961_v52 = vadd.f32 %v960_v49, %v912_v47  ;;  %v990_v53 = vadd.f32 %v1409_v50, %v979_v45  ;;  %v996_v61 = vmax.f32 %v992_v56, 0.0 }
 0x12c   :  { %v993_v54 = vadd.f32 %v1409_v50, %v982_v51  ;;  %v980_v55 = vmul.f32 %v1408_v41, %v961_v52  ;;  %v994_v59 = vmax.f32 %v990_v53, 0.0 }
 0x12e   :  { %v991_v57 = vadd.f32 %v1409_v50, %v980_v55  ;;  %v997_v58 = vmax.f32 %v993_v54, 0.0 }
 0x130   :  { %v995_v60 = vmax.f32 %v991_v57, 0.0  ;;  %v999_v63 = vpack.c.bf16 %v997_v58, %v996_v61 }
 0x132   :  { %v998_v62 = vpack.c.bf16 %v995_v60, %v994_v59 }
 0x134   :  { %1629 = vmatprep.mubr.bf16.mxu1 %v998_v62 }
 0x135   :  { %1630 = vmatmul.mubr.bf16.vlgmr.msra.gmra.mxu1 %v999_v63 }
 0x143   :  { %v1651_v0 = vpop.f32.mrf.mxu0 }
 0x144   :  { %v1273_v5 = vmul.f32 %v1651_v0, %v1430_v2 }
 0x145   :  { %v1249_v1 = vpop.f32.mrf.mxu0 }
 0x146   :  { %v1271_v10 = vmul.f32 %v1430_v2, %v1249_v1  ;;  %v1284_v13 = vadd.f32 %v1431_v6, %v1273_v5 }
 0x147   :  { %v1652_v3 = vpop.f32.mrf.mxu0 }
 0x148   :  { %v1274_v14 = vmul.f32 %v1652_v3, %v1430_v2  ;;  %v1282_v21 = vadd.f32 %v1431_v6, %v1271_v10 }
 0x149   :  { %v1252_v11 = vpop.f32.mrf.mxu0 }
 0x14a   :  { %v1272_v18 = vmul.f32 %v1430_v2, %v1252_v11  ;;  %v1285_v23 = vadd.f32 %v1431_v6, %v1274_v14 }
 0x14c   :  { %v1283_v27 = vadd.f32 %v1431_v6, %v1272_v18 }
 0x1f5   :  { %v1631_v7 = vpop.f32.mrf.mxu1 }
 0x1f6   :  { %v1122_v9 = vmul.f32 %v1631_v7, %v1418_v4 }
 0x1f7   :  { %v1098_v12 = vpop.f32.mrf.mxu1 }
 0x1f8   :  { %v1133_v15 = vadd.f32 %v1419_v8, %v1122_v9  ;;  %v1120_v16 = vmul.f32 %v1418_v4, %v1098_v12 }
 0x1f9   :  { %v1632_v17 = vpop.f32.mrf.mxu1 }
 0x1fa   :  { %v1131_v19 = vadd.f32 %v1419_v8, %v1120_v16  ;;  %v1123_v20 = vmul.f32 %v1632_v17, %v1418_v4  ;;  %v1288_v24 = vadd.f32 %v1284_v13, %v1133_v15 }
 0x1fb   :  { %v1101_v22 = vpop.f32.mrf.mxu1 }
 0x1fc   :  { %v1134_v25 = vadd.f32 %v1419_v8, %v1123_v20  ;;  %v1121_v26 = vmul.f32 %v1418_v4, %v1101_v22  ;;  %v1286_v28 = vadd.f32 %v1282_v21, %v1131_v19  ;;  %v1292_v31 = vmax.f32 %v1288_v24, 0.0 }
 0x1fe   :  { %v1289_v29 = vadd.f32 %v1285_v23, %v1134_v25  ;;  %v1132_v30 = vadd.f32 %v1419_v8, %v1121_v26  ;;  %v1290_v34 = vmax.f32 %v1286_v28, 0.0 }
 0x200   :  { %v1293_v32 = vmax.f32 %v1289_v29, 0.0  ;;  %v1287_v33 = vadd.f32 %v1283_v27, %v1132_v30 }
 0x202   :  { %v1448_v35 = vpack.c.bf16 %v1293_v32, %v1292_v31  ;;  %v1291_v36 = vmax.f32 %v1287_v33, 0.0 }
 0x204   :  { %1450 = vst [vmem:[%s2188_s11 + $0x8] sm:$0xff] %v1448_v35   ;;  %v1443_v37 = vpack.c.bf16 %v1291_v36, %v1290_v34 }
 0x206   :  { %1444 = vst [vmem:[%s2188_s11] sm:$0xff] %v1443_v37  }

</bundles_post_ra>
